<compile_context>
chip_gen: v6e
topology: v6e:2x2x1
jax: 0.10.0
libtpu: 0.0.40
codegen_flags: <defaults>
</compile_context>

<pallas_src>
import jax
import jax.numpy as jnp
from jax.experimental import pallas as pl
from jax.experimental.pallas import tpu as pltpu

# ------------------------- config (small, synthetic) -------------------------
VOCAB_SIZE = 64
BLOCK_SIZE = 32          # model/embedding dim (torch config.block_size)
N_HEAD = 4
N_KV_HEAD = 2
HEAD_DIM = 8             # n_head * head_dim == 32 == n_embed
HIDDEN_DIM = 64
N_LAYER = 2
RMS_EPS = 1e-6
ROPE_THETA = 10000.0
REPEATS = N_HEAD // N_KV_HEAD
Q_DIM = N_HEAD * HEAD_DIM
KV_DIM = N_KV_HEAD * HEAD_DIM
VOCAB_PAD = max(128, ((VOCAB_SIZE + 127) // 128) * 128)   # lane-dense output

# bf16 per-layer weight slab layout (rows; everything starts at lane 0):
_W13_ROW = 0                              # [D, 2*hidden]      rows 0:32
_QKV_ROW = _W13_ROW + BLOCK_SIZE          # [D, qd+2kd]        rows 32:64
_WO_ROW = _QKV_ROW + BLOCK_SIZE           # [qd, D]            rows 64:96
_W2_ROW = _WO_ROW + Q_DIM                 # [hidden, D]        rows 96:160
_WSLAB_ROWS = _W2_ROW + HIDDEN_DIM        # 160
_WSLAB_COLS = 128

# bf16 misc slab layout (layer-independent constants):
_WOUT_ROW = 0                             # [D, VOCAB_PAD]     rows 0:32
_ROTQ_ROW = _WOUT_ROW + BLOCK_SIZE        # [qd, qd]           rows 32:64
_ROTK_ROW = _ROTQ_ROW + Q_DIM             # [kd, kd]           rows 64:80
_MISC_ROWS = _ROTK_ROW + KV_DIM           # 80


# ------------------------------- fused kernel --------------------------------
def _fused_transformer_kernel(h_ref, rope_ref, norms_ref, misc_ref, wslab_ref,
                              o_ref):
  """Whole transformer forward on one [T, D] token slab, fully VMEM-resident."""
  f32, bf16 = jnp.float32, jnp.bfloat16
  T = h_ref.shape[0]

  def rms(x, w):                                   # f32 rmsnorm (VPU/EUP)
    ms = jnp.mean(x * x, axis=-1, keepdims=True)
    return x * jax.lax.rsqrt(ms + RMS_EPS) * w

  def rope(x, cos, sin, rot):
    # interleaved complex rotation: out = x*cos + (x @ R)*sin with R a tiny
    # block-diagonal +/-1 matrix -> one MXU op, lane-dense, no stride-2 gathers.
    xr = jnp.dot(x.astype(bf16), rot, preferred_element_type=f32)
    return x * cos + xr * sin

  def split_heads(x, groups):
    # [T, n*Dh] -> [len(groups), T, Dh] via static lane slices + leading concat.
    return jnp.concatenate(
        [x[:, g * HEAD_DIM:(g + 1) * HEAD_DIM][None] for g in groups], axis=0)

  # ----- constants (single slabs; static ref slices, all lane-0 aligned) -----
  cos_q = rope_ref[0:T, :]                         # [T, qd] f32
  sin_q = rope_ref[T:2 * T, :]
  cos_k = cos_q[:, :KV_DIM]                        # per-head pattern repeats
  sin_k = sin_q[:, :KV_DIM]
  rot_q = misc_ref[_ROTQ_ROW:_ROTQ_ROW + Q_DIM, 0:Q_DIM]       # bf16 [qd, qd]
  rot_k = misc_ref[_ROTK_ROW:_ROTK_ROW + KV_DIM, 0:KV_DIM]     # bf16 [kd, kd]

  kv_groups = [hh // REPEATS for hh in range(N_HEAD)]          # GQA head->group

  h = h_ref[...].astype(f32)                       # [T, D] residual stream (f32)

  # TODO(synk): at real depths move `l` onto the grid (per-layer BlockSpecs +
  # fori_loop, h in VMEM scratch) so weights stream and live ranges stay
  # bounded; static unroll is only right at N_LAYER=2.
  for l in range(N_LAYER):
    # ----------------------------- attention ---------------------------------
    wqkv_t = wslab_ref[l, _QKV_ROW:_QKV_ROW + BLOCK_SIZE, 0:Q_DIM + 2 * KV_DIM]
    wo_t = wslab_ref[l, _WO_ROW:_WO_ROW + Q_DIM, 0:BLOCK_SIZE]

    xn = rms(h, norms_ref[l:l + 1, :])             # [T, D] f32
    qkv = jnp.dot(xn.astype(bf16), wqkv_t,         # fused q|k|v projection
                  preferred_element_type=f32)      # [T, qd+2kd] f32
    xq = rope(qkv[:, :Q_DIM], cos_q, sin_q, rot_q)              # [T, qd]
    xk = rope(qkv[:, Q_DIM:Q_DIM + KV_DIM], cos_k, sin_k, rot_k)  # [T, kd]
    xv = qkv[:, Q_DIM + KV_DIM:]                                # [T, kd]

    q3 = split_heads(xq, list(range(N_HEAD))).astype(bf16)      # [H, T, Dh]
    k3 = split_heads(xk, kv_groups).astype(bf16)                # GQA expansion
    v3 = split_heads(xv, kv_groups).astype(bf16)

    # Full (non-causal) attention over the packed tokens (cache=None ->
    # mask=None in the torch reference). 1/sqrt(Dh) is folded into q weights.
    s = jnp.einsum("htd,hsd->hts", q3, k3,
                   preferred_element_type=f32)                  # [H, T, T]
    m = jnp.max(s, axis=-1, keepdims=True)
    p = jnp.exp(s - m)
    p = p * pl.reciprocal(jnp.sum(p, axis=-1, keepdims=True), approx=True)
    o3 = jnp.einsum("hts,hsd->htd", p.astype(bf16), v3,
                    preferred_element_type=f32)                 # [H, T, Dh]
    # merge heads along lanes, then a single o-projection matmul
    o_cat = jnp.concatenate([o3[hh] for hh in range(N_HEAD)], axis=-1)  # [T, qd]
    h = h + jnp.dot(o_cat.astype(bf16), wo_t, preferred_element_type=f32)

    # ---------------------------- SwiGLU FFN ---------------------------------
    w13_t = wslab_ref[l, _W13_ROW:_W13_ROW + BLOCK_SIZE, :]     # [D, 2*hidden]
    w2_t = wslab_ref[l, _W2_ROW:_W2_ROW + HIDDEN_DIM, 0:BLOCK_SIZE]

    hn = rms(h, norms_ref[N_LAYER + l:N_LAYER + l + 1, :])
    h13 = jnp.dot(hn.astype(bf16), w13_t,
                  preferred_element_type=f32)                   # [T, 128] lane-dense
    h1 = h13[:, :HIDDEN_DIM]
    h3 = h13[:, HIDDEN_DIM:]
    act = h1 * jax.nn.sigmoid(h1) * h3             # silu(w1 x) * w3 x, f32 math
    h = h + jnp.dot(act.astype(bf16), w2_t, preferred_element_type=f32)

  # ---------------------- final norm + padded vocab proj ---------------------
  hf = rms(h, norms_ref[2 * N_LAYER:2 * N_LAYER + 1, :])
  wout_t = misc_ref[_WOUT_ROW:_WOUT_ROW + BLOCK_SIZE, :]        # [D, 128]
  o_ref[...] = jnp.dot(hf.astype(bf16), wout_t,
                       preferred_element_type=f32).astype(o_ref.dtype)


def _full_spec(shape):
  nd = len(shape)
  return pl.BlockSpec(shape, lambda i, _nd=nd: (0,) * _nd)


# ------------------------------ RoPE tables (glue) ----------------------------
def rope_cos_sin(positions, head_dim, theta):
  freqs = 1.0 / (theta ** (jnp.arange(0, head_dim, 2, dtype=jnp.float32) / head_dim))
  ang = positions.astype(jnp.float32)[:, None] * freqs[None, :]   # [T, Dh/2]
  return jnp.cos(ang), jnp.sin(ang)


def _rope_rotation_matrix(n_heads, head_dim):
  """Block-diag R s.t. (x @ R)[..., 2i] = -x[..., 2i+1], (x @ R)[..., 2i+1] = x[..., 2i]."""
  half = head_dim // 2
  idx = jnp.arange(half)
  r = jnp.zeros((head_dim, head_dim), jnp.float32)
  r = r.at[2 * idx + 1, 2 * idx].set(-1.0)
  r = r.at[2 * idx, 2 * idx + 1].set(1.0)
  return jnp.kron(jnp.eye(n_heads, dtype=jnp.float32), r)


# ------------------------------ parameters ------------------------------------
def init_params(key):
  """Parameters in the torch nn.Linear layout ([out_features, in_features])."""
  def lin(k, out_f, in_f):
    return jax.random.normal(k, (out_f, in_f), jnp.float32) * (
        1.0 / jnp.sqrt(jnp.float32(in_f)))

  keys = jax.random.split(key, 2 + N_LAYER)
  params = {
      "vocab_embed": jax.random.normal(keys[0], (VOCAB_SIZE, BLOCK_SIZE),
                                       jnp.float32) * 0.02,
      "norm_w": jnp.ones((BLOCK_SIZE,), jnp.float32),
      "output_w": lin(keys[1], VOCAB_SIZE, BLOCK_SIZE),
      "layers": [],
  }
  for i in range(N_LAYER):
    lk = jax.random.split(keys[2 + i], 7)
    params["layers"].append(dict(
        attn_norm_w=jnp.ones((BLOCK_SIZE,), jnp.float32),
        ffn_norm_w=jnp.ones((BLOCK_SIZE,), jnp.float32),
        q_w=lin(lk[0], N_HEAD * HEAD_DIM, BLOCK_SIZE),
        k_w=lin(lk[1], N_KV_HEAD * HEAD_DIM, BLOCK_SIZE),
        v_w=lin(lk[2], N_KV_HEAD * HEAD_DIM, BLOCK_SIZE),
        o_w=lin(lk[3], BLOCK_SIZE, N_HEAD * HEAD_DIM),
        w1=lin(lk[4], HIDDEN_DIM, BLOCK_SIZE),
        w2=lin(lk[5], BLOCK_SIZE, HIDDEN_DIM),
        w3=lin(lk[6], HIDDEN_DIM, BLOCK_SIZE),
    ))
  return params


def pack_params(params):
  """One-time packing: bf16 weight slabs, scale folding, pre-transposes."""
  bf = jnp.bfloat16
  layers = params["layers"]
  scale = HEAD_DIM ** -0.5

  # f32 norm-weight slab: rows [0:L) attn, [L:2L) ffn, [2L] final.
  norms = jnp.stack(
      [l["attn_norm_w"] for l in layers] + [l["ffn_norm_w"] for l in layers]
      + [params["norm_w"]], axis=0)                                   # [2L+1, D]

  # bf16 per-layer weight slab [L, 160, 128]; all sub-blocks start at lane 0
  # and at 8-aligned sublane offsets so in-kernel ref slices are cheap.
  def pack_layer(l):
    blk = jnp.zeros((_WSLAB_ROWS, _WSLAB_COLS), jnp.float32)
    w13_t = jnp.concatenate([l["w1"], l["w3"]], axis=0).T             # [D, 2H]
    wqkv_t = jnp.concatenate(                                         # scale folded
        [l["q_w"] * scale, l["k_w"], l["v_w"]], axis=0).T             # [D, qd+2kd]
    blk = blk.at[_W13_ROW:_W13_ROW + BLOCK_SIZE, :2 * HIDDEN_DIM].set(w13_t)
    blk = blk.at[_QKV_ROW:_QKV_ROW + BLOCK_SIZE, :Q_DIM + 2 * KV_DIM].set(wqkv_t)
    blk = blk.at[_WO_ROW:_WO_ROW + Q_DIM, :BLOCK_SIZE].set(l["o_w"].T)
    blk = blk.at[_W2_ROW:_W2_ROW + HIDDEN_DIM, :BLOCK_SIZE].set(l["w2"].T)
    return blk
  wslab = jnp.stack([pack_layer(l) for l in layers], axis=0).astype(bf)

  # bf16 misc slab: padded vocab projection + RoPE +/-1 rotation matrices.
  misc = jnp.zeros((_MISC_ROWS, VOCAB_PAD), jnp.float32)
  misc = misc.at[_WOUT_ROW:_WOUT_ROW + BLOCK_SIZE,
                 :VOCAB_SIZE].set(params["output_w"].T)
  misc = misc.at[_ROTQ_ROW:_ROTQ_ROW + Q_DIM,
                 :Q_DIM].set(_rope_rotation_matrix(N_HEAD, HEAD_DIM))
  misc = misc.at[_ROTK_ROW:_ROTK_ROW + KV_DIM,
                 :KV_DIM].set(_rope_rotation_matrix(N_KV_HEAD, HEAD_DIM))

  return dict(vocab_embed=params["vocab_embed"], norms=norms,
              wslab=wslab, misc=misc.astype(bf))


# ------------------------------- forward --------------------------------------
def transformer_forward(packed, input_ids, positions):
  T = input_ids.shape[0]
  h0 = packed["vocab_embed"][input_ids]                      # embedding gather (glue)

  # RoPE cos/sin, interleaved and tiled over q heads; cos|sin stacked into a
  # single [2T, qd] slab so the kernel gets ONE constant DMA for it.
  cos, sin = rope_cos_sin(positions, HEAD_DIM, ROPE_THETA)   # [T, Dh/2]
  cos_i = jnp.repeat(cos, 2, axis=-1)                        # interleaved [T, Dh]
  sin_i = jnp.repeat(sin, 2, axis=-1)
  rope_tab = jnp.concatenate(
      [jnp.tile(cos_i, (1, N_HEAD)), jnp.tile(sin_i, (1, N_HEAD))], axis=0)

  ins = (h0, rope_tab, packed["norms"], packed["misc"], packed["wslab"])

  out = pl.pallas_call(
      _fused_transformer_kernel,
      grid=(1,),
      in_specs=[_full_spec(x.shape) for x in ins],
      out_specs=_full_spec((T, VOCAB_PAD)),
      out_shape=jax.ShapeDtypeStruct((T, VOCAB_PAD), jnp.float32),
      compiler_params=pltpu.CompilerParams(dimension_semantics=("arbitrary",)),
  )(*ins)
  return out[:, :VOCAB_SIZE]          # drop vocab padding (outs.float())


# --------------------------- pure-JAX reference --------------------------------
def reference_forward(params, input_ids, positions):
  # Matches the kernel's bf16 weight quantization (f32 activations/accumulate).
  bfr = lambda w: w.astype(jnp.bfloat16).astype(jnp.float32)
  h = params["vocab_embed"][input_ids]
  cos, sin = rope_cos_sin(positions, HEAD_DIM, ROPE_THETA)
  scale = HEAD_DIM ** -0.5
  T = h.shape[0]

  def rms(x, w):
    x = x.astype(jnp.float32)
    return x * jax.lax.rsqrt(jnp.mean(x * x, -1, keepdims=True) + RMS_EPS) * w

  def rope_apply(x):  # x: [T, H, Dh], interleaved complex pairing
    xr, xi = x[..., 0::2], x[..., 1::2]
    c, s = cos[:, None, :], sin[:, None, :]
    return jnp.stack([xr * c - xi * s, xr * s + xi * c], -1).reshape(x.shape)

  for layer in params["layers"]:
    xn = rms(h, layer["attn_norm_w"])
    xq = (xn @ bfr(layer["q_w"]).T).reshape(T, N_HEAD, HEAD_DIM)
    xk = (xn @ bfr(layer["k_w"]).T).reshape(T, N_KV_HEAD, HEAD_DIM)
    xv = (xn @ bfr(layer["v_w"]).T).reshape(T, N_KV_HEAD, HEAD_DIM)
    xq, xk = rope_apply(xq), rope_apply(xk)
    k = jnp.repeat(xk, REPEATS, axis=1)      # repeat_interleave == repeat_kv
    v = jnp.repeat(xv, REPEATS, axis=1)
    s = jnp.einsum("thd,shd->hts", xq, k) * scale
    p = jax.nn.softmax(s, axis=-1)
    o = jnp.einsum("hts,shd->thd", p, v).reshape(T, N_HEAD * HEAD_DIM)
    h = h + o @ bfr(layer["o_w"]).T
    hn = rms(h, layer["ffn_norm_w"])
    h = h + (jax.nn.silu(hn @ bfr(layer["w1"]).T)
             * (hn @ bfr(layer["w3"]).T)) @ bfr(layer["w2"]).T
  h = rms(h, params["norm_w"])
  return (h @ bfr(params["output_w"]).T).astype(jnp.float32)


# ----------------------------------- main --------------------------------------
if __name__ == "__main__":
  key = jax.random.PRNGKey(0)
  pkey, ikey = jax.random.split(key)
  params = init_params(pkey)
  packed = pack_params(params)       # one-time weight packing (outside hot path)

  seq_lens = [5, 3]
  n_tokens = sum(seq_lens)
  input_ids = jax.random.randint(ikey, (n_tokens,), 0, VOCAB_SIZE, dtype=jnp.int32)
  positions = jnp.concatenate(
      [jnp.arange(l, dtype=jnp.int32) for l in seq_lens])  # SimpleInputMetadata

  out = jax.jit(transformer_forward)(packed, input_ids, positions)
  jax.block_until_ready(out)

  assert out.shape == (n_tokens, VOCAB_SIZE) and out.dtype == jnp.float32
  ref = reference_forward(params, input_ids, positions)
  max_err = float(jnp.max(jnp.abs(out - ref)))
  assert jnp.allclose(out, ref, rtol=5e-2, atol=5e-2), f"max abs err {max_err}"
  print("KERNEL_OK")
</pallas_src>

<mosaic_0001>
module attributes {stable_mosaic.version = 11 : i64} {
  func.func @_fused_transformer_kernel(%arg0: i32, %arg1: memref<8x32xf32, #tpu.memory_space<vmem>>, %arg2: memref<16x32xf32, #tpu.memory_space<vmem>>, %arg3: memref<5x32xf32, #tpu.memory_space<vmem>>, %arg4: memref<80x128xbf16, #tpu.memory_space<vmem>>, %arg5: memref<2x160x128xbf16, #tpu.memory_space<vmem>>, %arg6: memref<8x128xf32, #tpu.memory_space<vmem>>) attributes {dimension_semantics = [#tpu.dimension_semantics<arbitrary>], iteration_bounds = array<i64: 1>, scalar_prefetch = 0 : i64, scratch_operands = 0 : i64, tpu.core_type = #tpu.core_type<tc>, window_params = [{pipeline_mode = #tpu.pipeline_mode<synchronous>, transform_indices = @transform_0, window_bounds = array<i64: 8, 32>}, {pipeline_mode = #tpu.pipeline_mode<synchronous>, transform_indices = @transform_1, window_bounds = array<i64: 16, 32>}, {pipeline_mode = #tpu.pipeline_mode<synchronous>, transform_indices = @transform_2, window_bounds = array<i64: 5, 32>}, {pipeline_mode = #tpu.pipeline_mode<synchronous>, transform_indices = @transform_3, window_bounds = array<i64: 80, 128>}, {pipeline_mode = #tpu.pipeline_mode<synchronous>, transform_indices = @transform_4, window_bounds = array<i64: 2, 160, 128>}, {pipeline_mode = #tpu.pipeline_mode<synchronous>, transform_indices = @transform_5, window_bounds = array<i64: 8, 128>}]} {
    %c0 = arith.constant 0 : index
    %c0_0 = arith.constant 0 : index
    %0 = vector.load %arg2[%c0, %c0_0] : memref<16x32xf32, #tpu.memory_space<vmem>>, vector<8x32xf32>
    %c8 = arith.constant 8 : index
    %c0_1 = arith.constant 0 : index
    %1 = vector.load %arg2[%c8, %c0_1] : memref<16x32xf32, #tpu.memory_space<vmem>>, vector<8x32xf32>
    %2 = vector.extract_strided_slice %0 {offsets = [0, 0], sizes = [8, 16], strides = [1, 1]} : vector<8x32xf32> to vector<8x16xf32>
    %3 = vector.extract_strided_slice %1 {offsets = [0, 0], sizes = [8, 16], strides = [1, 1]} : vector<8x32xf32> to vector<8x16xf32>
    %c32 = arith.constant 32 : index
    %c0_2 = arith.constant 0 : index
    %4 = vector.load %arg4[%c32, %c0_2] : memref<80x128xbf16, #tpu.memory_space<vmem>>, vector<32x32xbf16>
    %c64 = arith.constant 64 : index
    %c0_3 = arith.constant 0 : index
    %5 = vector.load %arg4[%c64, %c0_3] : memref<80x128xbf16, #tpu.memory_space<vmem>>, vector<16x16xbf16>
    %c0_4 = arith.constant 0 : index
    %c0_5 = arith.constant 0 : index
    %6 = vector.load %arg1[%c0_4, %c0_5] : memref<8x32xf32, #tpu.memory_space<vmem>>, vector<8x32xf32>
    %c0_6 = arith.constant 0 : index
    %c32_7 = arith.constant 32 : index
    %c0_8 = arith.constant 0 : index
    %7 = vector.load %arg5[%c0_6, %c32_7, %c0_8] : memref<2x160x128xbf16, #tpu.memory_space<vmem>>, vector<1x32x64xbf16>
    %8 = vector.shape_cast %7 : vector<1x32x64xbf16> to vector<32x64xbf16>
    %c0_9 = arith.constant 0 : index
    %c64_10 = arith.constant 64 : index
    %c0_11 = arith.constant 0 : index
    %9 = vector.load %arg5[%c0_9, %c64_10, %c0_11] : memref<2x160x128xbf16, #tpu.memory_space<vmem>>, vector<1x32x32xbf16>
    %10 = vector.shape_cast %9 : vector<1x32x32xbf16> to vector<32x32xbf16>
    %c0_12 = arith.constant 0 : index
    %c0_13 = arith.constant 0 : index
    %11 = vector.load %arg3[%c0_12, %c0_13] : memref<5x32xf32, #tpu.memory_space<vmem>>, vector<1x32xf32>
    %12 = arith.mulf %6, %6 : vector<8x32xf32>
    %cst = arith.constant dense<0.000000e+00> : vector<8xf32>
    %13 = vector.multi_reduction <add>, %12, %cst [1] : vector<8x32xf32> to vector<8xf32>
    %14 = vector.shape_cast %13 : vector<8xf32> to vector<8x1xf32>
    %cst_14 = arith.constant 3.200000e+01 : f32
    %15 = vector.broadcast %cst_14 : f32 to vector<8x1xf32>
    %16 = arith.divf %14, %15 : vector<8x1xf32>
    %cst_15 = arith.constant 9.99999997E-7 : f32
    %17 = vector.broadcast %cst_15 : f32 to vector<8x1xf32>
    %18 = arith.addf %16, %17 : vector<8x1xf32>
    %19 = math.rsqrt %18 : vector<8x1xf32>
    %20 = vector.broadcast %19 : vector<8x1xf32> to vector<8x32xf32>
    %21 = arith.mulf %6, %20 : vector<8x32xf32>
    %22 = vector.broadcast %11 : vector<1x32xf32> to vector<8x32xf32>
    %23 = arith.mulf %21, %22 : vector<8x32xf32>
    %24 = arith.truncf %23 : vector<8x32xf32> to vector<8x32xbf16>
    %cst_16 = arith.constant dense<0.000000e+00> : vector<8x64xf32>
    %25 = tpu.matmul %24, %8, %cst_16 {dimension_numbers = #tpu.dot_dimension_numbers<[1], [0], [0], [1], [0, 0, 1, 1], [], []>} : vector<8x32xbf16>, vector<32x64xbf16>, vector<8x64xf32> -> vector<8x64xf32>
    %26 = vector.extract_strided_slice %25 {offsets = [0, 0], sizes = [8, 32], strides = [1, 1]} : vector<8x64xf32> to vector<8x32xf32>
    %27 = arith.truncf %26 : vector<8x32xf32> to vector<8x32xbf16>
    %cst_17 = arith.constant dense<0.000000e+00> : vector<8x32xf32>
    %28 = tpu.matmul %27, %4, %cst_17 {dimension_numbers = #tpu.dot_dimension_numbers<[1], [0], [0], [1], [0, 0, 1, 1], [], []>} : vector<8x32xbf16>, vector<32x32xbf16>, vector<8x32xf32> -> vector<8x32xf32>
    %29 = arith.mulf %26, %0 : vector<8x32xf32>
    %30 = arith.mulf %28, %1 : vector<8x32xf32>
    %31 = arith.addf %29, %30 : vector<8x32xf32>
    %32 = vector.extract_strided_slice %25 {offsets = [0, 32], sizes = [8, 16], strides = [1, 1]} : vector<8x64xf32> to vector<8x16xf32>
    %33 = arith.truncf %32 : vector<8x16xf32> to vector<8x16xbf16>
    %cst_18 = arith.constant dense<0.000000e+00> : vector<8x16xf32>
    %34 = tpu.matmul %33, %5, %cst_18 {dimension_numbers = #tpu.dot_dimension_numbers<[1], [0], [0], [1], [0, 0, 1, 1], [], []>} : vector<8x16xbf16>, vector<16x16xbf16>, vector<8x16xf32> -> vector<8x16xf32>
    %35 = arith.mulf %32, %2 : vector<8x16xf32>
    %36 = arith.mulf %34, %3 : vector<8x16xf32>
    %37 = arith.addf %35, %36 : vector<8x16xf32>
    %38 = vector.extract_strided_slice %25 {offsets = [0, 48], sizes = [8, 16], strides = [1, 1]} : vector<8x64xf32> to vector<8x16xf32>
    %39 = vector.extract_strided_slice %31 {offsets = [0, 0], sizes = [8, 8], strides = [1, 1]} : vector<8x32xf32> to vector<8x8xf32>
    %40 = vector.shape_cast %39 : vector<8x8xf32> to vector<1x8x8xf32>
    %41 = vector.extract_strided_slice %31 {offsets = [0, 8], sizes = [8, 8], strides = [1, 1]} : vector<8x32xf32> to vector<8x8xf32>
    %42 = vector.shape_cast %41 : vector<8x8xf32> to vector<1x8x8xf32>
    %43 = vector.extract_strided_slice %31 {offsets = [0, 16], sizes = [8, 8], strides = [1, 1]} : vector<8x32xf32> to vector<8x8xf32>
    %44 = vector.shape_cast %43 : vector<8x8xf32> to vector<1x8x8xf32>
    %45 = vector.extract_strided_slice %31 {offsets = [0, 24], sizes = [8, 8], strides = [1, 1]} : vector<8x32xf32> to vector<8x8xf32>
    %46 = vector.shape_cast %45 : vector<8x8xf32> to vector<1x8x8xf32>
    %47 = tpu.concatenate %40, %42, %44, %46 in 0 : vector<1x8x8xf32>, vector<1x8x8xf32>, vector<1x8x8xf32>, vector<1x8x8xf32> -> vector<4x8x8xf32>
    %48 = arith.truncf %47 : vector<4x8x8xf32> to vector<4x8x8xbf16>
    %49 = vector.extract_strided_slice %37 {offsets = [0, 0], sizes = [8, 8], strides = [1, 1]} : vector<8x16xf32> to vector<8x8xf32>
    %50 = vector.shape_cast %49 : vector<8x8xf32> to vector<1x8x8xf32>
    %51 = vector.extract_strided_slice %37 {offsets = [0, 0], sizes = [8, 8], strides = [1, 1]} : vector<8x16xf32> to vector<8x8xf32>
    %52 = vector.shape_cast %51 : vector<8x8xf32> to vector<1x8x8xf32>
    %53 = vector.extract_strided_slice %37 {offsets = [0, 8], sizes = [8, 8], strides = [1, 1]} : vector<8x16xf32> to vector<8x8xf32>
    %54 = vector.shape_cast %53 : vector<8x8xf32> to vector<1x8x8xf32>
    %55 = vector.extract_strided_slice %37 {offsets = [0, 8], sizes = [8, 8], strides = [1, 1]} : vector<8x16xf32> to vector<8x8xf32>
    %56 = vector.shape_cast %55 : vector<8x8xf32> to vector<1x8x8xf32>
    %57 = tpu.concatenate %50, %52, %54, %56 in 0 : vector<1x8x8xf32>, vector<1x8x8xf32>, vector<1x8x8xf32>, vector<1x8x8xf32> -> vector<4x8x8xf32>
    %58 = arith.truncf %57 : vector<4x8x8xf32> to vector<4x8x8xbf16>
    %59 = vector.extract_strided_slice %38 {offsets = [0, 0], sizes = [8, 8], strides = [1, 1]} : vector<8x16xf32> to vector<8x8xf32>
    %60 = vector.shape_cast %59 : vector<8x8xf32> to vector<1x8x8xf32>
    %61 = vector.extract_strided_slice %38 {offsets = [0, 0], sizes = [8, 8], strides = [1, 1]} : vector<8x16xf32> to vector<8x8xf32>
    %62 = vector.shape_cast %61 : vector<8x8xf32> to vector<1x8x8xf32>
    %63 = vector.extract_strided_slice %38 {offsets = [0, 8], sizes = [8, 8], strides = [1, 1]} : vector<8x16xf32> to vector<8x8xf32>
    %64 = vector.shape_cast %63 : vector<8x8xf32> to vector<1x8x8xf32>
    %65 = vector.extract_strided_slice %38 {offsets = [0, 8], sizes = [8, 8], strides = [1, 1]} : vector<8x16xf32> to vector<8x8xf32>
    %66 = vector.shape_cast %65 : vector<8x8xf32> to vector<1x8x8xf32>
    %67 = tpu.concatenate %60, %62, %64, %66 in 0 : vector<1x8x8xf32>, vector<1x8x8xf32>, vector<1x8x8xf32>, vector<1x8x8xf32> -> vector<4x8x8xf32>
    %68 = arith.truncf %67 : vector<4x8x8xf32> to vector<4x8x8xbf16>
    "tpu.trace_start"() <{level = 10 : i32, message = "htd,hsd->hts"}> : () -> ()
    %cst_19 = arith.constant dense<0.000000e+00> : vector<4x8x8xf32>
    %69 = tpu.matmul %48, %58, %cst_19 {dimension_numbers = #tpu.dot_dimension_numbers<[2], [2], [1], [1], [0, 0, 0, 1, 1, 1], [0], [0]>} : vector<4x8x8xbf16>, vector<4x8x8xbf16>, vector<4x8x8xf32> -> vector<4x8x8xf32>
    "tpu.trace_stop"() : () -> ()
    %cst_20 = arith.constant dense<0xFF800000> : vector<4x8xf32>
    %70 = vector.multi_reduction <maximumf>, %69, %cst_20 [2] : vector<4x8x8xf32> to vector<4x8xf32>
    %71 = vector.shape_cast %70 : vector<4x8xf32> to vector<4x8x1xf32>
    %72 = vector.broadcast %71 : vector<4x8x1xf32> to vector<4x8x8xf32>
    %73 = arith.subf %69, %72 : vector<4x8x8xf32>
    %74 = math.exp %73 : vector<4x8x8xf32>
    %cst_21 = arith.constant dense<0.000000e+00> : vector<4x8xf32>
    %75 = vector.multi_reduction <add>, %74, %cst_21 [2] : vector<4x8x8xf32> to vector<4x8xf32>
    %76 = vector.shape_cast %75 : vector<4x8xf32> to vector<4x8x1xf32>
    %77 = tpu.reciprocal %76 {approx = true} : vector<4x8x1xf32> -> vector<4x8x1xf32>
    %78 = vector.broadcast %77 : vector<4x8x1xf32> to vector<4x8x8xf32>
    %79 = arith.mulf %74, %78 : vector<4x8x8xf32>
    %80 = arith.truncf %79 : vector<4x8x8xf32> to vector<4x8x8xbf16>
    "tpu.trace_start"() <{level = 10 : i32, message = "hts,hsd->htd"}> : () -> ()
    %cst_22 = arith.constant dense<0.000000e+00> : vector<4x8x8xf32>
    %81 = tpu.matmul %80, %68, %cst_22 {dimension_numbers = #tpu.dot_dimension_numbers<[2], [1], [1], [2], [0, 0, 0, 1, 1, 2], [0], [0]>} : vector<4x8x8xbf16>, vector<4x8x8xbf16>, vector<4x8x8xf32> -> vector<4x8x8xf32>
    "tpu.trace_stop"() : () -> ()
    %82 = vector.extract_strided_slice %81 {offsets = [0, 0, 0], sizes = [1, 8, 8], strides = [1, 1, 1]} : vector<4x8x8xf32> to vector<1x8x8xf32>
    %83 = vector.shape_cast %82 : vector<1x8x8xf32> to vector<8x8xf32>
    %84 = vector.extract_strided_slice %81 {offsets = [1, 0, 0], sizes = [1, 8, 8], strides = [1, 1, 1]} : vector<4x8x8xf32> to vector<1x8x8xf32>
    %85 = vector.shape_cast %84 : vector<1x8x8xf32> to vector<8x8xf32>
    %86 = vector.extract_strided_slice %81 {offsets = [2, 0, 0], sizes = [1, 8, 8], strides = [1, 1, 1]} : vector<4x8x8xf32> to vector<1x8x8xf32>
    %87 = vector.shape_cast %86 : vector<1x8x8xf32> to vector<8x8xf32>
    %88 = vector.extract_strided_slice %81 {offsets = [3, 0, 0], sizes = [1, 8, 8], strides = [1, 1, 1]} : vector<4x8x8xf32> to vector<1x8x8xf32>
    %89 = vector.shape_cast %88 : vector<1x8x8xf32> to vector<8x8xf32>
    %90 = tpu.concatenate %83, %85, %87, %89 in 1 : vector<8x8xf32>, vector<8x8xf32>, vector<8x8xf32>, vector<8x8xf32> -> vector<8x32xf32>
    %91 = arith.truncf %90 : vector<8x32xf32> to vector<8x32xbf16>
    %cst_23 = arith.constant dense<0.000000e+00> : vector<8x32xf32>
    %92 = tpu.matmul %91, %10, %cst_23 {dimension_numbers = #tpu.dot_dimension_numbers<[1], [0], [0], [1], [0, 0, 1, 1], [], []>} : vector<8x32xbf16>, vector<32x32xbf16>, vector<8x32xf32> -> vector<8x32xf32>
    %93 = arith.addf %6, %92 : vector<8x32xf32>
    %c0_24 = arith.constant 0 : index
    %c0_25 = arith.constant 0 : index
    %c0_26 = arith.constant 0 : index
    %94 = vector.load %arg5[%c0_24, %c0_25, %c0_26] : memref<2x160x128xbf16, #tpu.memory_space<vmem>>, vector<1x32x128xbf16>
    %95 = vector.shape_cast %94 : vector<1x32x128xbf16> to vector<32x128xbf16>
    %c0_27 = arith.constant 0 : index
    %c96 = arith.constant 96 : index
    %c0_28 = arith.constant 0 : index
    %96 = vector.load %arg5[%c0_27, %c96, %c0_28] : memref<2x160x128xbf16, #tpu.memory_space<vmem>>, vector<1x64x32xbf16>
    %97 = vector.shape_cast %96 : vector<1x64x32xbf16> to vector<64x32xbf16>
    %c2 = arith.constant 2 : index
    %c0_29 = arith.constant 0 : index
    %98 = vector.load %arg3[%c2, %c0_29] : memref<5x32xf32, #tpu.memory_space<vmem>>, vector<1x32xf32>
    %99 = arith.mulf %93, %93 : vector<8x32xf32>
    %cst_30 = arith.constant dense<0.000000e+00> : vector<8xf32>
    %100 = vector.multi_reduction <add>, %99, %cst_30 [1] : vector<8x32xf32> to vector<8xf32>
    %101 = vector.shape_cast %100 : vector<8xf32> to vector<8x1xf32>
    %cst_31 = arith.constant 3.200000e+01 : f32
    %102 = vector.broadcast %cst_31 : f32 to vector<8x1xf32>
    %103 = arith.divf %101, %102 : vector<8x1xf32>
    %cst_32 = arith.constant 9.99999997E-7 : f32
    %104 = vector.broadcast %cst_32 : f32 to vector<8x1xf32>
    %105 = arith.addf %103, %104 : vector<8x1xf32>
    %106 = math.rsqrt %105 : vector<8x1xf32>
    %107 = vector.broadcast %106 : vector<8x1xf32> to vector<8x32xf32>
    %108 = arith.mulf %93, %107 : vector<8x32xf32>
    %109 = vector.broadcast %98 : vector<1x32xf32> to vector<8x32xf32>
    %110 = arith.mulf %108, %109 : vector<8x32xf32>
    %111 = arith.truncf %110 : vector<8x32xf32> to vector<8x32xbf16>
    %cst_33 = arith.constant dense<0.000000e+00> : vector<8x128xf32>
    %112 = tpu.matmul %111, %95, %cst_33 {dimension_numbers = #tpu.dot_dimension_numbers<[1], [0], [0], [1], [0, 0, 1, 1], [], []>} : vector<8x32xbf16>, vector<32x128xbf16>, vector<8x128xf32> -> vector<8x128xf32>
    %113 = vector.extract_strided_slice %112 {offsets = [0, 0], sizes = [8, 64], strides = [1, 1]} : vector<8x128xf32> to vector<8x64xf32>
    %114 = vector.extract_strided_slice %112 {offsets = [0, 64], sizes = [8, 64], strides = [1, 1]} : vector<8x128xf32> to vector<8x64xf32>
    %115 = arith.negf %113 : vector<8x64xf32>
    %116 = math.exp %115 : vector<8x64xf32>
    %cst_34 = arith.constant 1.000000e+00 : f32
    %117 = vector.broadcast %cst_34 : f32 to vector<8x64xf32>
    %118 = arith.addf %117, %116 : vector<8x64xf32>
    %119 = arith.divf %117, %118 : vector<8x64xf32>
    %120 = arith.mulf %113, %119 : vector<8x64xf32>
    %121 = arith.mulf %120, %114 : vector<8x64xf32>
    %122 = arith.truncf %121 : vector<8x64xf32> to vector<8x64xbf16>
    %cst_35 = arith.constant dense<0.000000e+00> : vector<8x32xf32>
    %123 = tpu.matmul %122, %97, %cst_35 {dimension_numbers = #tpu.dot_dimension_numbers<[1], [0], [0], [1], [0, 0, 1, 1], [], []>} : vector<8x64xbf16>, vector<64x32xbf16>, vector<8x32xf32> -> vector<8x32xf32>
    %124 = arith.addf %93, %123 : vector<8x32xf32>
    %c1 = arith.constant 1 : index
    %c32_36 = arith.constant 32 : index
    %c0_37 = arith.constant 0 : index
    %125 = vector.load %arg5[%c1, %c32_36, %c0_37] : memref<2x160x128xbf16, #tpu.memory_space<vmem>>, vector<1x32x64xbf16>
    %126 = vector.shape_cast %125 : vector<1x32x64xbf16> to vector<32x64xbf16>
    %c1_38 = arith.constant 1 : index
    %c64_39 = arith.constant 64 : index
    %c0_40 = arith.constant 0 : index
    %127 = vector.load %arg5[%c1_38, %c64_39, %c0_40] : memref<2x160x128xbf16, #tpu.memory_space<vmem>>, vector<1x32x32xbf16>
    %128 = vector.shape_cast %127 : vector<1x32x32xbf16> to vector<32x32xbf16>
    %c1_41 = arith.constant 1 : index
    %c0_42 = arith.constant 0 : index
    %129 = vector.load %arg3[%c1_41, %c0_42] : memref<5x32xf32, #tpu.memory_space<vmem>>, vector<1x32xf32>
    %130 = arith.mulf %124, %124 : vector<8x32xf32>
    %cst_43 = arith.constant dense<0.000000e+00> : vector<8xf32>
    %131 = vector.multi_reduction <add>, %130, %cst_43 [1] : vector<8x32xf32> to vector<8xf32>
    %132 = vector.shape_cast %131 : vector<8xf32> to vector<8x1xf32>
    %cst_44 = arith.constant 3.200000e+01 : f32
    %133 = vector.broadcast %cst_44 : f32 to vector<8x1xf32>
    %134 = arith.divf %132, %133 : vector<8x1xf32>
    %cst_45 = arith.constant 9.99999997E-7 : f32
    %135 = vector.broadcast %cst_45 : f32 to vector<8x1xf32>
    %136 = arith.addf %134, %135 : vector<8x1xf32>
    %137 = math.rsqrt %136 : vector<8x1xf32>
    %138 = vector.broadcast %137 : vector<8x1xf32> to vector<8x32xf32>
    %139 = arith.mulf %124, %138 : vector<8x32xf32>
    %140 = vector.broadcast %129 : vector<1x32xf32> to vector<8x32xf32>
    %141 = arith.mulf %139, %140 : vector<8x32xf32>
    %142 = arith.truncf %141 : vector<8x32xf32> to vector<8x32xbf16>
    %cst_46 = arith.constant dense<0.000000e+00> : vector<8x64xf32>
    %143 = tpu.matmul %142, %126, %cst_46 {dimension_numbers = #tpu.dot_dimension_numbers<[1], [0], [0], [1], [0, 0, 1, 1], [], []>} : vector<8x32xbf16>, vector<32x64xbf16>, vector<8x64xf32> -> vector<8x64xf32>
    %144 = vector.extract_strided_slice %143 {offsets = [0, 0], sizes = [8, 32], strides = [1, 1]} : vector<8x64xf32> to vector<8x32xf32>
    %145 = arith.truncf %144 : vector<8x32xf32> to vector<8x32xbf16>
    %cst_47 = arith.constant dense<0.000000e+00> : vector<8x32xf32>
    %146 = tpu.matmul %145, %4, %cst_47 {dimension_numbers = #tpu.dot_dimension_numbers<[1], [0], [0], [1], [0, 0, 1, 1], [], []>} : vector<8x32xbf16>, vector<32x32xbf16>, vector<8x32xf32> -> vector<8x32xf32>
    %147 = arith.mulf %144, %0 : vector<8x32xf32>
    %148 = arith.mulf %146, %1 : vector<8x32xf32>
    %149 = arith.addf %147, %148 : vector<8x32xf32>
    %150 = vector.extract_strided_slice %143 {offsets = [0, 32], sizes = [8, 16], strides = [1, 1]} : vector<8x64xf32> to vector<8x16xf32>
    %151 = arith.truncf %150 : vector<8x16xf32> to vector<8x16xbf16>
    %cst_48 = arith.constant dense<0.000000e+00> : vector<8x16xf32>
    %152 = tpu.matmul %151, %5, %cst_48 {dimension_numbers = #tpu.dot_dimension_numbers<[1], [0], [0], [1], [0, 0, 1, 1], [], []>} : vector<8x16xbf16>, vector<16x16xbf16>, vector<8x16xf32> -> vector<8x16xf32>
    %153 = arith.mulf %150, %2 : vector<8x16xf32>
    %154 = arith.mulf %152, %3 : vector<8x16xf32>
    %155 = arith.addf %153, %154 : vector<8x16xf32>
    %156 = vector.extract_strided_slice %143 {offsets = [0, 48], sizes = [8, 16], strides = [1, 1]} : vector<8x64xf32> to vector<8x16xf32>
    %157 = vector.extract_strided_slice %149 {offsets = [0, 0], sizes = [8, 8], strides = [1, 1]} : vector<8x32xf32> to vector<8x8xf32>
    %158 = vector.shape_cast %157 : vector<8x8xf32> to vector<1x8x8xf32>
    %159 = vector.extract_strided_slice %149 {offsets = [0, 8], sizes = [8, 8], strides = [1, 1]} : vector<8x32xf32> to vector<8x8xf32>
    %160 = vector.shape_cast %159 : vector<8x8xf32> to vector<1x8x8xf32>
    %161 = vector.extract_strided_slice %149 {offsets = [0, 16], sizes = [8, 8], strides = [1, 1]} : vector<8x32xf32> to vector<8x8xf32>
    %162 = vector.shape_cast %161 : vector<8x8xf32> to vector<1x8x8xf32>
    %163 = vector.extract_strided_slice %149 {offsets = [0, 24], sizes = [8, 8], strides = [1, 1]} : vector<8x32xf32> to vector<8x8xf32>
    %164 = vector.shape_cast %163 : vector<8x8xf32> to vector<1x8x8xf32>
    %165 = tpu.concatenate %158, %160, %162, %164 in 0 : vector<1x8x8xf32>, vector<1x8x8xf32>, vector<1x8x8xf32>, vector<1x8x8xf32> -> vector<4x8x8xf32>
    %166 = arith.truncf %165 : vector<4x8x8xf32> to vector<4x8x8xbf16>
    %167 = vector.extract_strided_slice %155 {offsets = [0, 0], sizes = [8, 8], strides = [1, 1]} : vector<8x16xf32> to vector<8x8xf32>
    %168 = vector.shape_cast %167 : vector<8x8xf32> to vector<1x8x8xf32>
    %169 = vector.extract_strided_slice %155 {offsets = [0, 0], sizes = [8, 8], strides = [1, 1]} : vector<8x16xf32> to vector<8x8xf32>
    %170 = vector.shape_cast %169 : vector<8x8xf32> to vector<1x8x8xf32>
    %171 = vector.extract_strided_slice %155 {offsets = [0, 8], sizes = [8, 8], strides = [1, 1]} : vector<8x16xf32> to vector<8x8xf32>
    %172 = vector.shape_cast %171 : vector<8x8xf32> to vector<1x8x8xf32>
    %173 = vector.extract_strided_slice %155 {offsets = [0, 8], sizes = [8, 8], strides = [1, 1]} : vector<8x16xf32> to vector<8x8xf32>
    %174 = vector.shape_cast %173 : vector<8x8xf32> to vector<1x8x8xf32>
    %175 = tpu.concatenate %168, %170, %172, %174 in 0 : vector<1x8x8xf32>, vector<1x8x8xf32>, vector<1x8x8xf32>, vector<1x8x8xf32> -> vector<4x8x8xf32>
    %176 = arith.truncf %175 : vector<4x8x8xf32> to vector<4x8x8xbf16>
    %177 = vector.extract_strided_slice %156 {offsets = [0, 0], sizes = [8, 8], strides = [1, 1]} : vector<8x16xf32> to vector<8x8xf32>
    %178 = vector.shape_cast %177 : vector<8x8xf32> to vector<1x8x8xf32>
    %179 = vector.extract_strided_slice %156 {offsets = [0, 0], sizes = [8, 8], strides = [1, 1]} : vector<8x16xf32> to vector<8x8xf32>
    %180 = vector.shape_cast %179 : vector<8x8xf32> to vector<1x8x8xf32>
    %181 = vector.extract_strided_slice %156 {offsets = [0, 8], sizes = [8, 8], strides = [1, 1]} : vector<8x16xf32> to vector<8x8xf32>
    %182 = vector.shape_cast %181 : vector<8x8xf32> to vector<1x8x8xf32>
    %183 = vector.extract_strided_slice %156 {offsets = [0, 8], sizes = [8, 8], strides = [1, 1]} : vector<8x16xf32> to vector<8x8xf32>
    %184 = vector.shape_cast %183 : vector<8x8xf32> to vector<1x8x8xf32>
    %185 = tpu.concatenate %178, %180, %182, %184 in 0 : vector<1x8x8xf32>, vector<1x8x8xf32>, vector<1x8x8xf32>, vector<1x8x8xf32> -> vector<4x8x8xf32>
    %186 = arith.truncf %185 : vector<4x8x8xf32> to vector<4x8x8xbf16>
    "tpu.trace_start"() <{level = 10 : i32, message = "htd,hsd->hts"}> : () -> ()
    %cst_49 = arith.constant dense<0.000000e+00> : vector<4x8x8xf32>
    %187 = tpu.matmul %166, %176, %cst_49 {dimension_numbers = #tpu.dot_dimension_numbers<[2], [2], [1], [1], [0, 0, 0, 1, 1, 1], [0], [0]>} : vector<4x8x8xbf16>, vector<4x8x8xbf16>, vector<4x8x8xf32> -> vector<4x8x8xf32>
    "tpu.trace_stop"() : () -> ()
    %cst_50 = arith.constant dense<0xFF800000> : vector<4x8xf32>
    %188 = vector.multi_reduction <maximumf>, %187, %cst_50 [2] : vector<4x8x8xf32> to vector<4x8xf32>
    %189 = vector.shape_cast %188 : vector<4x8xf32> to vector<4x8x1xf32>
    %190 = vector.broadcast %189 : vector<4x8x1xf32> to vector<4x8x8xf32>
    %191 = arith.subf %187, %190 : vector<4x8x8xf32>
    %192 = math.exp %191 : vector<4x8x8xf32>
    %cst_51 = arith.constant dense<0.000000e+00> : vector<4x8xf32>
    %193 = vector.multi_reduction <add>, %192, %cst_51 [2] : vector<4x8x8xf32> to vector<4x8xf32>
    %194 = vector.shape_cast %193 : vector<4x8xf32> to vector<4x8x1xf32>
    %195 = tpu.reciprocal %194 {approx = true} : vector<4x8x1xf32> -> vector<4x8x1xf32>
    %196 = vector.broadcast %195 : vector<4x8x1xf32> to vector<4x8x8xf32>
    %197 = arith.mulf %192, %196 : vector<4x8x8xf32>
    %198 = arith.truncf %197 : vector<4x8x8xf32> to vector<4x8x8xbf16>
    "tpu.trace_start"() <{level = 10 : i32, message = "hts,hsd->htd"}> : () -> ()
    %cst_52 = arith.constant dense<0.000000e+00> : vector<4x8x8xf32>
    %199 = tpu.matmul %198, %186, %cst_52 {dimension_numbers = #tpu.dot_dimension_numbers<[2], [1], [1], [2], [0, 0, 0, 1, 1, 2], [0], [0]>} : vector<4x8x8xbf16>, vector<4x8x8xbf16>, vector<4x8x8xf32> -> vector<4x8x8xf32>
    "tpu.trace_stop"() : () -> ()
    %200 = vector.extract_strided_slice %199 {offsets = [0, 0, 0], sizes = [1, 8, 8], strides = [1, 1, 1]} : vector<4x8x8xf32> to vector<1x8x8xf32>
    %201 = vector.shape_cast %200 : vector<1x8x8xf32> to vector<8x8xf32>
    %202 = vector.extract_strided_slice %199 {offsets = [1, 0, 0], sizes = [1, 8, 8], strides = [1, 1, 1]} : vector<4x8x8xf32> to vector<1x8x8xf32>
    %203 = vector.shape_cast %202 : vector<1x8x8xf32> to vector<8x8xf32>
    %204 = vector.extract_strided_slice %199 {offsets = [2, 0, 0], sizes = [1, 8, 8], strides = [1, 1, 1]} : vector<4x8x8xf32> to vector<1x8x8xf32>
    %205 = vector.shape_cast %204 : vector<1x8x8xf32> to vector<8x8xf32>
    %206 = vector.extract_strided_slice %199 {offsets = [3, 0, 0], sizes = [1, 8, 8], strides = [1, 1, 1]} : vector<4x8x8xf32> to vector<1x8x8xf32>
    %207 = vector.shape_cast %206 : vector<1x8x8xf32> to vector<8x8xf32>
    %208 = tpu.concatenate %201, %203, %205, %207 in 1 : vector<8x8xf32>, vector<8x8xf32>, vector<8x8xf32>, vector<8x8xf32> -> vector<8x32xf32>
    %209 = arith.truncf %208 : vector<8x32xf32> to vector<8x32xbf16>
    %cst_53 = arith.constant dense<0.000000e+00> : vector<8x32xf32>
    %210 = tpu.matmul %209, %128, %cst_53 {dimension_numbers = #tpu.dot_dimension_numbers<[1], [0], [0], [1], [0, 0, 1, 1], [], []>} : vector<8x32xbf16>, vector<32x32xbf16>, vector<8x32xf32> -> vector<8x32xf32>
    %211 = arith.addf %124, %210 : vector<8x32xf32>
    %c1_54 = arith.constant 1 : index
    %c0_55 = arith.constant 0 : index
    %c0_56 = arith.constant 0 : index
    %212 = vector.load %arg5[%c1_54, %c0_55, %c0_56] : memref<2x160x128xbf16, #tpu.memory_space<vmem>>, vector<1x32x128xbf16>
    %213 = vector.shape_cast %212 : vector<1x32x128xbf16> to vector<32x128xbf16>
    %c1_57 = arith.constant 1 : index
    %c96_58 = arith.constant 96 : index
    %c0_59 = arith.constant 0 : index
    %214 = vector.load %arg5[%c1_57, %c96_58, %c0_59] : memref<2x160x128xbf16, #tpu.memory_space<vmem>>, vector<1x64x32xbf16>
    %215 = vector.shape_cast %214 : vector<1x64x32xbf16> to vector<64x32xbf16>
    %c3 = arith.constant 3 : index
    %c0_60 = arith.constant 0 : index
    %216 = vector.load %arg3[%c3, %c0_60] : memref<5x32xf32, #tpu.memory_space<vmem>>, vector<1x32xf32>
    %217 = arith.mulf %211, %211 : vector<8x32xf32>
    %cst_61 = arith.constant dense<0.000000e+00> : vector<8xf32>
    %218 = vector.multi_reduction <add>, %217, %cst_61 [1] : vector<8x32xf32> to vector<8xf32>
    %219 = vector.shape_cast %218 : vector<8xf32> to vector<8x1xf32>
    %cst_62 = arith.constant 3.200000e+01 : f32
    %220 = vector.broadcast %cst_62 : f32 to vector<8x1xf32>
    %221 = arith.divf %219, %220 : vector<8x1xf32>
    %cst_63 = arith.constant 9.99999997E-7 : f32
    %222 = vector.broadcast %cst_63 : f32 to vector<8x1xf32>
    %223 = arith.addf %221, %222 : vector<8x1xf32>
    %224 = math.rsqrt %223 : vector<8x1xf32>
    %225 = vector.broadcast %224 : vector<8x1xf32> to vector<8x32xf32>
    %226 = arith.mulf %211, %225 : vector<8x32xf32>
    %227 = vector.broadcast %216 : vector<1x32xf32> to vector<8x32xf32>
    %228 = arith.mulf %226, %227 : vector<8x32xf32>
    %229 = arith.truncf %228 : vector<8x32xf32> to vector<8x32xbf16>
    %cst_64 = arith.constant dense<0.000000e+00> : vector<8x128xf32>
    %230 = tpu.matmul %229, %213, %cst_64 {dimension_numbers = #tpu.dot_dimension_numbers<[1], [0], [0], [1], [0, 0, 1, 1], [], []>} : vector<8x32xbf16>, vector<32x128xbf16>, vector<8x128xf32> -> vector<8x128xf32>
    %231 = vector.extract_strided_slice %230 {offsets = [0, 0], sizes = [8, 64], strides = [1, 1]} : vector<8x128xf32> to vector<8x64xf32>
    %232 = vector.extract_strided_slice %230 {offsets = [0, 64], sizes = [8, 64], strides = [1, 1]} : vector<8x128xf32> to vector<8x64xf32>
    %233 = arith.negf %231 : vector<8x64xf32>
    %234 = math.exp %233 : vector<8x64xf32>
    %cst_65 = arith.constant 1.000000e+00 : f32
    %235 = vector.broadcast %cst_65 : f32 to vector<8x64xf32>
    %236 = arith.addf %235, %234 : vector<8x64xf32>
    %237 = arith.divf %235, %236 : vector<8x64xf32>
    %238 = arith.mulf %231, %237 : vector<8x64xf32>
    %239 = arith.mulf %238, %232 : vector<8x64xf32>
    %240 = arith.truncf %239 : vector<8x64xf32> to vector<8x64xbf16>
    %cst_66 = arith.constant dense<0.000000e+00> : vector<8x32xf32>
    %241 = tpu.matmul %240, %215, %cst_66 {dimension_numbers = #tpu.dot_dimension_numbers<[1], [0], [0], [1], [0, 0, 1, 1], [], []>} : vector<8x64xbf16>, vector<64x32xbf16>, vector<8x32xf32> -> vector<8x32xf32>
    %242 = arith.addf %211, %241 : vector<8x32xf32>
    %c4 = arith.constant 4 : index
    %c0_67 = arith.constant 0 : index
    %243 = vector.load %arg3[%c4, %c0_67] : memref<5x32xf32, #tpu.memory_space<vmem>>, vector<1x32xf32>
    %244 = arith.mulf %242, %242 : vector<8x32xf32>
    %cst_68 = arith.constant dense<0.000000e+00> : vector<8xf32>
    %245 = vector.multi_reduction <add>, %244, %cst_68 [1] : vector<8x32xf32> to vector<8xf32>
    %246 = vector.shape_cast %245 : vector<8xf32> to vector<8x1xf32>
    %cst_69 = arith.constant 3.200000e+01 : f32
    %247 = vector.broadcast %cst_69 : f32 to vector<8x1xf32>
    %248 = arith.divf %246, %247 : vector<8x1xf32>
    %cst_70 = arith.constant 9.99999997E-7 : f32
    %249 = vector.broadcast %cst_70 : f32 to vector<8x1xf32>
    %250 = arith.addf %248, %249 : vector<8x1xf32>
    %251 = math.rsqrt %250 : vector<8x1xf32>
    %252 = vector.broadcast %251 : vector<8x1xf32> to vector<8x32xf32>
    %253 = arith.mulf %242, %252 : vector<8x32xf32>
    %254 = vector.broadcast %243 : vector<1x32xf32> to vector<8x32xf32>
    %255 = arith.mulf %253, %254 : vector<8x32xf32>
    %c0_71 = arith.constant 0 : index
    %c0_72 = arith.constant 0 : index
    %256 = vector.load %arg4[%c0_71, %c0_72] : memref<80x128xbf16, #tpu.memory_space<vmem>>, vector<32x128xbf16>
    %257 = arith.truncf %255 : vector<8x32xf32> to vector<8x32xbf16>
    %cst_73 = arith.constant dense<0.000000e+00> : vector<8x128xf32>
    %258 = tpu.matmul %257, %256, %cst_73 {dimension_numbers = #tpu.dot_dimension_numbers<[1], [0], [0], [1], [0, 0, 1, 1], [], []>} : vector<8x32xbf16>, vector<32x128xbf16>, vector<8x128xf32> -> vector<8x128xf32>
    %c0_74 = arith.constant 0 : index
    %c0_75 = arith.constant 0 : index
    %259 = vector.load %arg6[%c0_74, %c0_75] : memref<8x128xf32, #tpu.memory_space<vmem>>, vector<8x128xf32>
    tpu.vector_store %arg6[%c0_74, %c0_75], %258 {strides = array<i32>} : memref<8x128xf32, #tpu.memory_space<vmem>>, vector<8x128xf32>,
    return
  }
  func.func @transform_0(%arg0: i32) -> (i32, i32) {
    %c0_i32 = arith.constant 0 : i32
    %c0_i32_0 = arith.constant 0 : i32
    %c0_i32_1 = arith.constant 0 : i32
    return %c0_i32, %c0_i32_0 : i32, i32
  }
  func.func @transform_1(%arg0: i32) -> (i32, i32) {
    %c0_i32 = arith.constant 0 : i32
    %c0_i32_0 = arith.constant 0 : i32
    %c0_i32_1 = arith.constant 0 : i32
    return %c0_i32, %c0_i32_0 : i32, i32
  }
  func.func @transform_2(%arg0: i32) -> (i32, i32) {
    %c0_i32 = arith.constant 0 : i32
    %c0_i32_0 = arith.constant 0 : i32
    %c0_i32_1 = arith.constant 0 : i32
    return %c0_i32, %c0_i32_0 : i32, i32
  }
  func.func @transform_3(%arg0: i32) -> (i32, i32) {
    %c0_i32 = arith.constant 0 : i32
    %c0_i32_0 = arith.constant 0 : i32
    %c0_i32_1 = arith.constant 0 : i32
    return %c0_i32, %c0_i32_0 : i32, i32
  }
  func.func @transform_4(%arg0: i32) -> (i32, i32, i32) {
    %c0_i32 = arith.constant 0 : i32
    %c0_i32_0 = arith.constant 0 : i32
    %c0_i32_1 = arith.constant 0 : i32
    %c0_i32_2 = arith.constant 0 : i32
    return %c0_i32, %c0_i32_0, %c0_i32_1 : i32, i32, i32
  }
  func.func @transform_5(%arg0: i32) -> (i32, i32) {
    %c0_i32 = arith.constant 0 : i32
    %c0_i32_0 = arith.constant 0 : i32
    %c0_i32_1 = arith.constant 0 : i32
    return %c0_i32, %c0_i32_0 : i32, i32
  }
}

</mosaic_0001>

<bundles_post_ra>
// kernel: tile.15
= control target key start
LH: loop header
LB: loop body
LE: loop exit
PB: predicated region body
PF: predicated region fallthrough
CT: control target
= control target key end

     0   :  { %vm43_vm0 = vcmask 1047556   ;;  %vm45_vm1 = vcmask 64512   ;;  %s94_s22 = smov 8   ;;  %s95_s25 = smov 16   ;;  %vm55_vm2 = vcmask 261312   ;;  %vm65_vm3 = vcmask 195712   ;;  %s147_s0 = inlined_call_operand.vmem [shape: f32[8,4,8], index: 0, kind: input, shape index: {}]   ;;  %s148_s1 = inlined_call_operand.vmem [shape: f32[8,32], index: 1, kind: output, shape index: {}]  }
   0x1   :  { %v83_v0 = vld [vmem:[%s147_s0 + $0x1c] sm:$0xf]  ;;  %v84_v1 = vld [vmem:[%s147_s0 + $0x18] sm:$0xf]  ;;  %v85_v2 = vld [vmem:[%s147_s0 + $0x14] sm:$0xf] }
   0x2   :  { %9 = vst [vmem:[#allocation0 + $0x38] sm:$0xf] %v83_v0  ;;  %14 = vst [vmem:[#allocation0 + $0x30] sm:$0xf] %v84_v1  ;;  %v86_v3 = vld [vmem:[%s147_s0 + $0x10] sm:$0xf] }
   0x3   :  { %19 = vst [vmem:[#allocation0 + $0x28] sm:$0xf] %v85_v2  ;;  %v87_v4 = vld [vmem:[%s147_s0 + $0xc] sm:$0xf]  ;;  %v88_v5 = vld [vmem:[%s147_s0 + $0x8] sm:$0xf] }
   0x4   :  { %24 = vst [vmem:[#allocation0 + $0x20] sm:$0xf] %v86_v3  ;;  %29 = vst [vmem:[#allocation0 + $0x18] sm:$0xf] %v87_v4  ;;  %v89_v6 = vld [vmem:[%s147_s0 + $0x4] sm:$0xf] }
   0x5   :  { %34 = vst [vmem:[#allocation0 + $0x10] sm:$0xf] %v88_v5  ;;  %v39_v7 = vld [vmem:[%s147_s0] sm:$0xf]  ;;  %38 = vst [vmem:[#allocation0 + $0x8] sm:$0xf] %v89_v6 }
   0x6   :  { %40 = vst [vmem:[#allocation0] sm:$0xf] %v39_v7  ;;  %s93_s0 = smov 24   ;;  %vm75_vm4 = vcmask 130112  }
   0xb   :  { %v50_v8 = vld [vmem:[#allocation0 + $0x3] ss:$8 sm:$0xf0]   ;;  %v60_v9 = vld [vmem:[#allocation0 + $0x2] ss:$8 sm:$0xf0]  }
   0xc   :  { %v70_v14 = vld [vmem:[#allocation0 + $0x1] ss:$8 sm:$0xf0]   ;;  %v42_v17 = vld [vmem:[#allocation0] ss:$8 sm:$0xf0]  }
   0xd   :  { %v48_v10 = vld [vmem:[#allocation0 + $0x3] ss:$8 sm:$0xf]   ;;  %v58_v11 = vld [vmem:[#allocation0 + $0x2] ss:$8 sm:$0xf]  }
   0xe   :  { %v52_v12 = vsel %vm43_vm0, %v50_v8, %v48_v10  ;;  %v68_v13 = vld [vmem:[#allocation0 + $0x1] ss:$8 sm:$0xf]   ;;  %v41_v16 = vld [vmem:[#allocation0] ss:$8 sm:$0xf]   ;;  %v62_v18 = vsel %vm43_vm0, %v60_v9, %v58_v11 }
   0xf   :  { %53 = vrot.lane.b32.xlu0 %v52_v12, %s93_s0  ;;  %v72_v15 = vsel %vm43_vm0, %v70_v14, %v68_v13  ;;  %v44_v19 = vsel %vm43_vm0, %v42_v17, %v41_v16 }
  0x10   :  { %73 = vrot.lane.b32.xlu1 %v72_v15, %s94_s22  ;;  %46 = vst.msk [vmem:[%s148_s1] sm:$0xff] %vm45_vm1, %v44_v19  }
  0x13   :  { %63 = vrot.lane.b32.xlu0 %v62_v18, %s95_s25 }
  0x81   :  { %v54_v20 = vpop.permute.xlu0 %53  }
  0x82   :  { %56 = vst.msk [vmem:[%s148_s1] sm:$0xff] %vm55_vm2, %v54_v20   ;;  %v74_v21 = vpop.permute.xlu1 %73  }
  0x85   :  { %v64_v22 = vpop.permute.xlu0 %63  }
  0x86   :  { %66 = vst.msk [vmem:[%s148_s1] sm:$0xff] %vm65_vm3, %v64_v22  }
  0x87   :  { %76 = vst.msk [vmem:[%s148_s1] sm:$0xff] %vm75_vm4, %v74_v21  }

// kernel: transformer_forward.1
= control target key start
LH: loop header
LB: loop body
LE: loop exit
PB: predicated region body
PF: predicated region fallthrough
CT: control target
= control target key end

     0   :  { %vm41_vm0 = vcmask 261120   ;;  %s2729_s0 = inlined_call_operand.vmem [shape: f32[8,32], index: 0, kind: input, shape index: {}]   ;;  %s2730_s1 = inlined_call_operand.vmem [shape: f32[16,32], index: 1, kind: input, shape index: {}]   ;;  %s2731_s2 = inlined_call_operand.vmem [shape: f32[5,32], index: 2, kind: input, shape index: {}]   ;;  %s2732_s3 = inlined_call_operand.vmem [shape: bf16[80,128], index: 3, kind: input, shape index: {}]   ;;  %s2733_s4 = inlined_call_operand.vmem [shape: bf16[2,160,128], index: 4, kind: input, shape index: {}]   ;;  %s2734_s5 = inlined_call_operand.hbm [shape: f32[8,128], index: 5, kind: output, shape index: {}]  }
   0x1   :  { %v2370_v0 = vld [vmem:[%s2729_s0] sm:$0xff] }
   0x2   :  { %v40_v1 = vmul.f32 %v2370_v0, %v2370_v0 }
   0x4   :  { %v42_v2 = vsel %vm41_vm0, %v40_v1, 0.0 }
   0x5   :  { %43 = vadd.xlane.f32.xlu0 %v42_v2 }
   0x6   :  { %10 = vsyncpa [#allocation3], 0  ;;  %v2227_v3 = vld [vmem:[%s2733_s4 + $0x18] sm:$0xff]   ;;  %v2324_v4 = vmov 0.0   ;;  %vm2325_vm1 = vmmov 0   ;;  %v2228_v5 = vld [vmem:[%s2733_s4 + $0x10] sm:$0xff]  }
   0x7   :  { %2010 = vmatprep.subr.bf16.mxu0 %v2324_v4  ;;  %2014 = vmatprep.mubr.msk.bf16.mxu0 %vm2325_vm1, %v2324_v4  ;;  %v2392_v6 = vld [vmem:[%s2730_s1] sm:$0xff]  ;;  %v2397_v7 = vld [vmem:[%s2732_s3 + $0x18] sm:$0xff]   ;;  %s2326_s27 = smov 32   ;;  %v2413_v16 = vld [vmem:[%s2732_s3 + $0x10] sm:$0xff]   ;;  %s2327_s9 = smov 96   ;;  %vm179_vm2 = vcmask 130048  }
   0x8   :  { %2011 = vmatpush3.bf16.msra.mxu0 %v2227_v3  ;;  %2018 = vmatprep.subr.bf16.mxu1 %v2324_v4  ;;  %v1856_v12 = vld [vmem:[%s2731_s2] ss:$0 sm:$0xff]  ;;  %v2442_v24 = vld [vmem:[%s2730_s1 + $0x8] sm:$0xff]  ;;  %s2328_s12 = smov 104   ;;  %s2329_s1 = smov 120   ;;  %vm262_vm3 = vcmask 64512  }
   0x9   :  { %2012 = vmatprep.subr.bf16.mxu0 %v2324_v4  ;;  %2022 = vmatprep.mubr.msk.bf16.mxu1 %vm2325_vm1, %v2324_v4  ;;  %v2420_v17 = vld [vmem:[%s2732_s3 + $0x20] sm:$0xff]   ;;  %s2330_s13 = smov 112   ;;  %s2331_s14 = smov 80   ;;  %vm497_vm4 = vcmask 1043456   ;;  %vm690_vm5 = vcmask 195584   ;;  %vm868_vm6 = vcmask 523264  }
   0xa   :  { %224 = vrot.lane.b32.xlu1 %v2392_v6, %s2326_s27  ;;  %2019 = vmatpush3.bf16.msra.mxu1 %v2397_v7  ;;  %s2332_s19 = smov 8   ;;  %s2333_s20 = smov 16  }
   0xb   :  { %2020 = vmatprep.subr.bf16.mxu1 %v2324_v4  ;;  %s2334_s21 = smov 24   ;;  %s2335_s15 = smov 64  }
   0xc   :  { %2013 = vmatpush3.bf16.msra.mxu0 %v2228_v5  ;;  %s2336_s18 = smov [#allocation2]  }
   0xd   :  { %2026 = vmatprep.subr.bf16.mxu0 %v2324_v4  ;;  %s1848_s0 = sshll.u32 %s2336_s18, 4  ;;  %s1849_s0 = int_to_ptr.vmem [resolvable:$true] %s1848_s0 }
   0xe   :  { %2021 = vmatpush3.bf16.msra.mxu1 %v2413_v16  ;;  %p2307_p1 = scmp.lt.s32.totalorder %s1849_s0, %s1849_s0 }
   0xf   :  { %2032 = vmatprep.subr.bf16.mxu1 %v2324_v4 }
  0x7c   :  { %v2450_v37 = vpop.permute.xlu1 %224 }
  0x8e   :  { %v44_v8 = vpop.xlane.xlu0 %43 }
  0x8f   :  { %v46_v9 = vmul.f32 0.03125, %v44_v8 }
  0x91   :  { %v47_v10 = vadd.f32 1e-06, %v46_v9 }
  0x93   :  { %2252 = vrsqrt.f32 %v47_v10 }
  0xa0   :  { %v2253_v11 = vpop.eup %2252 }
  0xa1   :  { %v49_v13 = vmul.f32 %v2253_v11, %v2370_v0 }
  0xa3   :  { %v54_v14 = vmul.f32 %v1856_v12, %v49_v13 }
  0xa5   :  { %v55_v15 = vpack.c.bf16 %v54_v14, %v54_v14 }
  0xa7   :  { %2015 = vmatmul.mubr.msk.bf16.vlgmr.msra.gmra.mxu0 %vm41_vm0, %v55_v15 }
  0xa8   :  { %2028 = vmatprep.mubr.msk.bf16.mxu0 %vm2325_vm1, %v2324_v4  ;;  %2027 = vmatpush3.bf16.msra.mxu0 %v2420_v17 }
  0xa9   :  { %2038 = vmatprep.subr.bf16.mxu0 %v2324_v4 }
 0x167   :  { %v2424_v18 = vpop.f32.mrf.mxu0 }
 0x168   :  { %v2428_v19 = vpack.c.bf16 %v2424_v18, %v2424_v18  ;;  %v167_v26 = vmul.f32 %v2424_v18, %v2392_v6  ;;  %v227_v38 = vmul.f32 %v2450_v37, %v2424_v18 }
 0x169   :  { %v2016_v20 = vpop.f32.mrf.mxu0 }
 0x16a   :  { %171 = vrot.lane.b32.xlu0 %v2428_v19, %s2327_s9  ;;  %2023 = vmatmul.mubr.msk.bf16.vlgmr.msra.gmra.mxu1 %vm41_vm0, %v2428_v19 }
 0x16b   :  { %v108_v21 = vpop.f32.mrf.mxu0  ;;  %2034 = vmatprep.mubr.msk.bf16.mxu1 %vm2325_vm1, %v2324_v4 }
 0x16d   :  { %v2017_v22 = vpop.f32.mrf.mxu0 }
 0x1dc   :  { %v172_v23 = vpop.permute.xlu0 %171 }
 0x1dd   :  { %2029 = vmatmul.mubr.msk.bf16.vlgmr.msra.gmra.mxu0 %vm179_vm2, %v172_v23 }
 0x1de   :  { %2040 = vmatprep.mubr.msk.bf16.mxu0 %vm2325_vm1, %v2324_v4 }
 0x22a   :  { %v161_v25 = vpop.f32.mrf.mxu1 }
 0x22b   :  { %v168_v27 = vmul.f32 %v161_v25, %v2442_v24 }
 0x22c   :  { %v2024_v28 = vpop.f32.mrf.mxu1 }
 0x22d   :  { %v169_v29 = vadd.f32 %v168_v27, %v167_v26 }
 0x22e   :  { %v164_v30 = vpop.f32.mrf.mxu1 }
 0x22f   :  { %241 = vrot.lane.b32.xlu0 %v169_v29, %s2328_s12  ;;  %v244_v47 = vpack.c.bf16 %v169_v29, %v169_v29 }
 0x230   :  { %v2025_v31 = vpop.f32.mrf.mxu1 }
 0x29d   :  { %v217_v32 = vpop.f32.mrf.mxu0 }
 0x29e   :  { %v228_v33 = vmul.f32 %v217_v32, %v2442_v24 }
 0x29f   :  { %v2030_v34 = vpop.f32.mrf.mxu0 }
 0x2a0   :  { %230 = vrot.lane.b32.xlu1 %v228_v33, %s2326_s27 }
 0x2a1   :  { %v220_v35 = vpop.f32.mrf.mxu0  ;;  %v242_v51 = vpop.permute.xlu0 %241 }
 0x2a2   :  { %v247_v53 = vpack.c.bf16 %v242_v51, %v242_v51 }
 0x2a3   :  { %v2031_v36 = vpop.f32.mrf.mxu0 }
 0x312   :  { %v231_v39 = vpop.permute.xlu1 %230 }
 0x313   :  { %v233_v40 = vadd.f32 %v231_v39, %v227_v38 }
 0x315   :  { %249 = vrot.lane.b32.xlu1 %v233_v40, %s2329_s1  ;;  %v252_v41 = vpack.c.bf16 %v233_v40, %v233_v40 }
 0x319   :  { %260 = vrot.lane.b32.xlu1 %v252_v41, %s2327_s9 }
 0x31d   :  { %235 = vrot.lane.b32.xlu1 %v169_v29, %s2329_s1 }
 0x387   :  { %v250_v42 = vpop.permute.xlu1 %249 }
 0x388   :  { %v253_v43 = vpack.c.bf16 %v250_v42, %v250_v42 }
 0x38a   :  { %353 = vrot.lane.b32.xlu1 %v253_v43, %s2327_s9 }
 0x38b   :  { %v261_v44 = vpop.permute.xlu1 %260 }
 0x38c   :  { %v267_v45 = vsel %vm262_vm3, %v261_v44, 0 }
 0x38d   :  { %2033 = vmatpush3.bf16.xpose.msra.mxu1 %v267_v45  ;;  %2039 = vmatpush3.bf16.xpose.msra.mxu0 %v267_v45 }
 0x38e   :  { %238 = vrot.lane.b32.xlu1 %v169_v29, %s2330_s13  ;;  %2044 = vmatprep.subr.bf16.mxu1 %v2324_v4 }
 0x38f   :  { %v236_v46 = vpop.permute.xlu1 %235  ;;  %2050 = vmatprep.subr.bf16.mxu0 %v2324_v4 }
 0x390   :  { %v245_v48 = vpack.c.bf16 %v236_v46, %v236_v46 }
 0x394   :  { %2035 = vmatmul.mubr.msk.bf16.vlgmr.msra.gmra.mxu1 %vm262_vm3, %v244_v47  ;;  %2041 = vmatmul.mubr.msk.bf16.vlgmr.msra.gmra.mxu0 %vm262_vm3, %v245_v48 }
 0x395   :  { %2046 = vmatprep.mubr.msk.bf16.mxu1 %vm2325_vm1, %v2324_v4  ;;  %2052 = vmatprep.mubr.msk.bf16.mxu0 %vm2325_vm1, %v2324_v4 }
 0x3fc   :  { %v354_v49 = vpop.permute.xlu1 %353 }
 0x3fd   :  { %v359_v50 = vsel %vm262_vm3, %v354_v49, 0 }
 0x3fe   :  { %2045 = vmatpush3.bf16.xpose.msra.mxu1 %v359_v50  ;;  %2051 = vmatpush3.bf16.xpose.msra.mxu0 %v359_v50 }
 0x3ff   :  { %2056 = vmatprep.subr.bf16.mxu1 %v2324_v4  ;;  %2062 = vmatprep.subr.bf16.mxu0 %v2324_v4 }
 0x400   :  { %v239_v52 = vpop.permute.xlu1 %238 }
 0x401   :  { %v246_v54 = vpack.c.bf16 %v239_v52, %v239_v52 }
 0x405   :  { %2047 = vmatmul.mubr.msk.bf16.vlgmr.msra.gmra.mxu1 %vm262_vm3, %v246_v54  ;;  %2053 = vmatmul.mubr.msk.bf16.vlgmr.msra.gmra.mxu0 %vm262_vm3, %v247_v53 }
 0x406   :  { %2058 = vmatprep.mubr.msk.bf16.mxu1 %vm2325_vm1, %v2324_v4  ;;  %2064 = vmatprep.mubr.msk.bf16.mxu0 %vm2325_vm1, %v2324_v4 }
 0x454   :  { %v303_v55 = vpop.f32.mrf.mxu1  ;;  %v346_v56 = vpop.f32.mrf.mxu0 }
 0x455   :  { %v447_v57 = vsel %vm262_vm3, %v346_v56, -inf  ;;  %v444_v58 = vsel %vm262_vm3, %v303_v55, -inf }
 0x456   :  { %448 = vmax.xlane.f32.xlu0 %v447_v57  ;;  %v2042_v59 = vpop.f32.mrf.mxu0  ;;  %445 = vmax.xlane.f32.xlu1 %v444_v58  ;;  %v2036_v60 = vpop.f32.mrf.mxu1 }
 0x458   :  { %v306_v61 = vpop.f32.mrf.mxu1  ;;  %v349_v62 = vpop.f32.mrf.mxu0 }
 0x459   :  { %v2232_v61 = vld [vmem:[%s2733_s4 + $0x28] sm:$0xff]   ;;  %v2233_v62 = vld [vmem:[%s2733_s4 + $0x20] sm:$0xff]  }
 0x45a   :  { %v2037_v63 = vpop.f32.mrf.mxu1  ;;  %v2043_v1 = vpop.f32.mrf.mxu0 }
 0x4c5   :  { %v395_v2 = vpop.f32.mrf.mxu1  ;;  %v438_v3 = vpop.f32.mrf.mxu0 }
 0x4c6   :  { %v453_v5 = vsel %vm262_vm3, %v438_v3, -inf  ;;  %v450_v8 = vsel %vm262_vm3, %v395_v2, -inf }
 0x4c7   :  { %v2054_v9 = vpop.f32.mrf.mxu0  ;;  %454 = vmax.xlane.f32.xlu1 %v453_v5  ;;  %451 = vmax.xlane.f32.xlu0 %v450_v8  ;;  %v2048_v10 = vpop.f32.mrf.mxu1 }
 0x4c9   :  { %v398_v11 = vpop.f32.mrf.mxu1  ;;  %v441_v12 = vpop.f32.mrf.mxu0 }
 0x4cb   :  { %v2049_v13 = vpop.f32.mrf.mxu1  ;;  %v2055_v14 = vpop.f32.mrf.mxu0 }
 0x4dd   :  { %255 = vrot.lane.b32.xlu0 %v2424_v18, %s2329_s1 }
 0x4df   :  { %v449_v15 = vpop.xlane.xlu0 %448  ;;  %v446_v20 = vpop.xlane.xlu1 %445 }
 0x4e0   :  { %v457_v21 = vsub.f32 %v346_v56, %v449_v15  ;;  %v456_v22 = vsub.f32 %v303_v55, %v446_v20 }
 0x4e2   :  { %v460_v23 = vmul.f32 1.442695, %v456_v22  ;;  %v462_v25 = vmul.f32 1.442695, %v457_v21 }
 0x4e4   :  { %2254 = vpow2.f32 %v460_v23 }
 0x4e5   :  { %2256 = vpow2.f32 %v462_v25 }
 0x4f1   :  { %v2255_v26 = vpop.eup %2254 }
 0x4f2   :  { %v468_v27 = vsel %vm262_vm3, %v2255_v26, 0.0  ;;  %v2257_v28 = vpop.eup %2256 }
 0x4f3   :  { %469 = vadd.xlane.f32.xlu1 %v468_v27  ;;  %v471_v29 = vsel %vm262_vm3, %v2257_v28, 0.0 }
 0x4f7   :  { %472 = vadd.xlane.f32.xlu1 %v471_v29 }
 0x550   :  { %v455_v30 = vpop.xlane.xlu1 %454  ;;  %v452_v31 = vpop.xlane.xlu0 %451 }
 0x551   :  { %v459_v32 = vsub.f32 %v438_v3, %v455_v30  ;;  %v458_v18 = vsub.f32 %v395_v2, %v452_v31 }
 0x553   :  { %v464_v33 = vmul.f32 1.442695, %v458_v18  ;;  %v466_v34 = vmul.f32 1.442695, %v459_v32 }
 0x554   :  { %v256_v35 = vpop.permute.xlu0 %255 }
 0x555   :  { %v258_v36 = vpack.c.bf16 %v256_v35, %v256_v35  ;;  %2258 = vpow2.f32 %v464_v33 }
 0x556   :  { %2260 = vpow2.f32 %v466_v34 }
 0x557   :  { %585 = vrot.lane.b32.xlu0 %v258_v36, %s2331_s14 }
 0x562   :  { %v2259_v38 = vpop.eup %2258 }
 0x563   :  { %v474_v39 = vsel %vm262_vm3, %v2259_v38, 0.0  ;;  %v2261_v40 = vpop.eup %2260 }
 0x564   :  { %475 = vadd.xlane.f32.xlu1 %v474_v39  ;;  %v477_v41 = vsel %vm262_vm3, %v2261_v40, 0.0  ;;  %v2235_v39 = vld [vmem:[%s2733_s4] sm:$0xff]  }
 0x568   :  { %478 = vadd.xlane.f32.xlu1 %v477_v41 }
 0x579   :  { %492 = vrot.lane.b32.xlu1 %v2428_v19, %s2331_s14 }
 0x57c   :  { %v470_v42 = vpop.xlane.xlu1 %469 }
 0x57d   :  { %2262 = vrcp.f32 %v470_v42 }
 0x580   :  { %v473_v43 = vpop.xlane.xlu1 %472 }
 0x581   :  { %2264 = vrcp.f32 %v473_v43  ;;  %v1876_v43 = vld [vmem:[%s2731_s2 + $0x2] ss:$0 sm:$0xff] }
 0x58a   :  { %v2263_v45 = vpop.eup %2262 }
 0x58b   :  { %v484_v48 = vmul.f32 %v2263_v45, %v2255_v26 }
 0x58d   :  { %v488_v19 = vpack.c.bf16 %v484_v48, %v484_v48  ;;  %v2237_v48 = vld [vmem:[%s2733_s4 + $0x40] sm:$0xff]  }
 0x58e   :  { %v2265_v46 = vpop.eup %2264 }
 0x58f   :  { %v485_v49 = vmul.f32 %v2265_v46, %v2257_v28 }
 0x591   :  { %v489_v53 = vpack.c.bf16 %v485_v49, %v485_v49  ;;  %v2238_v49 = vld [vmem:[%s2733_s4 + $0x38] sm:$0xff]  }
 0x5c9   :  { %v586_v52 = vpop.permute.xlu0 %585 }
 0x5ca   :  { %v591_v54 = vsel %vm497_vm4, %v586_v52, 0 }
 0x5ed   :  { %v476_v44 = vpop.xlane.xlu1 %475 }
 0x5ee   :  { %2266 = vrcp.f32 %v476_v44 }
 0x5f1   :  { %v479_v47 = vpop.xlane.xlu1 %478 }
 0x5f2   :  { %2268 = vrcp.f32 %v479_v47  ;;  %v2236_v47 = vld [vmem:[%s2733_s4 + $0x48] sm:$0xff]  }
 0x5f5   :  { %v493_v50 = vpop.permute.xlu1 %492 }
 0x5f6   :  { %v499_v51 = vsel %vm497_vm4, %v493_v50, 0  ;;  %v2239_v50 = vld [vmem:[%s2733_s4 + $0x30] sm:$0xff]  }
 0x5f7   :  { %2057 = vmatpush3.bf16.msra.mxu1 %v499_v51  ;;  %2063 = vmatpush3.bf16.msra.mxu0 %v499_v51 }
 0x5f8   :  { %2068 = vmatprep.subr.bf16.mxu1 %v2324_v4  ;;  %2074 = vmatprep.subr.bf16.mxu0 %v2324_v4 }
 0x5fa   :  { %2059 = vmatmul.mubr.msk.bf16.vlgmr.msra.gmra.mxu1 %vm262_vm3, %v488_v19  ;;  %2065 = vmatmul.mubr.msk.bf16.vlgmr.msra.gmra.mxu0 %vm262_vm3, %v489_v53 }
 0x5fb   :  { %v2267_v55 = vpop.eup %2266  ;;  %2069 = vmatpush3.bf16.msra.mxu1 %v591_v54  ;;  %2075 = vmatpush3.bf16.msra.mxu0 %v591_v54 }
 0x5fc   :  { %2070 = vmatprep.mubr.msk.bf16.mxu1 %vm2325_vm1, %v2324_v4  ;;  %v486_v56 = vmul.f32 %v2267_v55, %v2259_v38  ;;  %2076 = vmatprep.mubr.msk.bf16.mxu0 %vm2325_vm1, %v2324_v4  ;;  %v2234_v38 = vld [vmem:[%s2733_s4 + $0x8] sm:$0xff]  }
 0x5fd   :  { %2080 = vmatprep.subr.bf16.mxu1 %v2324_v4  ;;  %2088 = vmatprep.subr.bf16.mxu0 %v2324_v4 }
 0x5fe   :  { %v490_v58 = vpack.c.bf16 %v486_v56, %v486_v56 }
 0x5ff   :  { %v2269_v57 = vpop.eup %2268 }
 0x600   :  { %v487_v59 = vmul.f32 %v2269_v57, %v2261_v40 }
 0x602   :  { %2071 = vmatmul.mubr.msk.bf16.vlgmr.msra.gmra.mxu1 %vm262_vm3, %v490_v58  ;;  %v491_v60 = vpack.c.bf16 %v487_v59, %v487_v59 }
 0x603   :  { %2084 = vmatprep.mubr.msk.bf16.mxu1 %vm2325_vm1, %v2324_v4  ;;  %2081 = vmatpush3.bf16.msra.mxu1 %v2232_v61 }
 0x604   :  { %2077 = vmatmul.mubr.msk.bf16.vlgmr.msra.gmra.mxu0 %vm262_vm3, %v491_v60  ;;  %2082 = vmatprep.subr.bf16.mxu1 %v2324_v4 }
 0x605   :  { %2092 = vmatprep.mubr.msk.bf16.mxu0 %vm2325_vm1, %v2324_v4  ;;  %2089 = vmatpush3.bf16.msra.mxu0 %v2234_v38 }
 0x606   :  { %2090 = vmatprep.subr.bf16.mxu0 %v2324_v4 }
 0x607   :  { %2083 = vmatpush3.bf16.msra.mxu1 %v2233_v62 }
 0x608   :  { %2096 = vmatprep.subr.bf16.mxu1 %v2324_v4 }
 0x609   :  { %2091 = vmatpush3.bf16.msra.mxu0 %v2235_v39 }
 0x60a   :  { %2108 = vmatprep.subr.bf16.mxu0 %v2324_v4 }
 0x6ba   :  { %v535_v63 = vpop.f32.mrf.mxu1  ;;  %v578_v1 = vpop.f32.mrf.mxu0 }
 0x6bb   :  { %677 = vrot.lane.b32.xlu0 %v578_v1, %s2332_s19 }
 0x6bc   :  { %v2060_v2 = vpop.f32.mrf.mxu1  ;;  %v2066_v3 = vpop.f32.mrf.mxu0 }
 0x6be   :  { %v538_v5 = vpop.f32.mrf.mxu1  ;;  %v581_v8 = vpop.f32.mrf.mxu0 }
 0x6c0   :  { %v2061_v9 = vpop.f32.mrf.mxu1  ;;  %v2067_v10 = vpop.f32.mrf.mxu0 }
 0x6c1   :  { %v2241_v9 = vld [vmem:[%s2733_s4 + $0x60] sm:$0xff]  }
 0x6c2   :  { %v627_v11 = vpop.f32.mrf.mxu1 }
 0x6c3   :  { %681 = vrot.lane.b32.xlu0 %v627_v11, %s2333_s20 }
 0x6c4   :  { %v2072_v12 = vpop.f32.mrf.mxu1  ;;  %v670_v13 = vpop.f32.mrf.mxu0 }
 0x6c6   :  { %v630_v14 = vpop.f32.mrf.mxu1  ;;  %v2078_v15 = vpop.f32.mrf.mxu0 }
 0x6c7   :  { %685 = vrot.lane.b32.xlu0 %v670_v13, %s2334_s21  ;;  %v1894_v14 = vld [vmem:[%s2731_s2 + $0x1] ss:$0 sm:$0xff] }
 0x6c8   :  { %v2073_v20 = vpop.f32.mrf.mxu1  ;;  %v673_v21 = vpop.f32.mrf.mxu0 }
 0x6ca   :  { %v2079_v22 = vpop.f32.mrf.mxu0 }
 0x72d   :  { %v678_v23 = vpop.permute.xlu0 %677 }
 0x72e   :  { %v688_v26 = vsel %vm262_vm3, %v535_v63, %v678_v23 }
 0x735   :  { %v682_v25 = vpop.permute.xlu0 %681 }
 0x736   :  { %v689_v27 = vsel %vm179_vm2, %v688_v26, %v682_v25 }
 0x739   :  { %v686_v28 = vpop.permute.xlu0 %685 }
 0x73a   :  { %v691_v29 = vsel %vm690_vm5, %v689_v27, %v686_v28 }
 0x73b   :  { %v692_v30 = vpack.c.bf16 %v691_v29, %v691_v29 }
 0x73d   :  { %2085 = vmatmul.mubr.msk.bf16.vlgmr.msra.gmra.mxu1 %vm41_vm0, %v692_v30 }
 0x73e   :  { %2104 = vmatprep.mubr.msk.bf16.mxu1 %vm2325_vm1, %v2324_v4  ;;  %2097 = vmatpush3.bf16.msra.mxu1 %v2236_v47 }
 0x73f   :  { %2098 = vmatprep.subr.bf16.mxu1 %v2324_v4 }
 0x742   :  { %2099 = vmatpush3.bf16.msra.mxu1 %v2237_v48 }
 0x743   :  { %2100 = vmatprep.subr.bf16.mxu1 %v2324_v4 }
 0x746   :  { %2101 = vmatpush3.bf16.msra.mxu1 %v2238_v49 }
 0x747   :  { %2102 = vmatprep.subr.bf16.mxu1 %v2324_v4 }
 0x74a   :  { %2103 = vmatpush3.bf16.msra.mxu1 %v2239_v50 }
 0x74b   :  { %2124 = vmatprep.subr.bf16.mxu1 %v2324_v4 }
 0x7fd   :  { %v742_v31 = vpop.f32.mrf.mxu1 }
 0x7fe   :  { %v748_v32 = vadd.f32 %v742_v31, %v2370_v0 }
 0x7ff   :  { %v2086_v18 = vpop.f32.mrf.mxu1 }
 0x800   :  { %v762_v33 = vmul.f32 %v748_v32, %v748_v32 }
 0x801   :  { %v745_v34 = vpop.f32.mrf.mxu1 }
 0x802   :  { %v763_v35 = vsel %vm41_vm0, %v762_v33, 0.0 }
 0x803   :  { %764 = vadd.xlane.f32.xlu1 %v763_v35  ;;  %v2087_v36 = vpop.f32.mrf.mxu1 }
 0x88c   :  { %v765_v0 = vpop.xlane.xlu1 %764 }
 0x88d   :  { %v766_v40 = vmul.f32 0.03125, %v765_v0 }
 0x88f   :  { %v767_v41 = vadd.f32 1e-06, %v766_v40 }
 0x891   :  { %2270 = vrsqrt.f32 %v767_v41 }
 0x89e   :  { %v2271_v42 = vpop.eup %2270 }
 0x89f   :  { %v769_v44 = vmul.f32 %v2271_v42, %v748_v32 }
 0x8a1   :  { %v774_v45 = vmul.f32 %v1876_v43, %v769_v44 }
 0x8a3   :  { %v775_v46 = vpack.c.bf16 %v774_v45, %v774_v45 }
 0x8a5   :  { %2093 = vmatmul.mubr.msk.bf16.vlgmr.msra.gmra.mxu0 %vm41_vm0, %v775_v46 }
 0x8a6   :  { %2112 = vmatprep.mubr.msk.bf16.mxu0 %vm2325_vm1, %v2324_v4 }
 0x965   :  { %v825_v51 = vpop.f32.mrf.mxu0 }
 0x966   :  { %839 = vrot.lane.b32.xlu0 %v825_v51, %s2335_s15  ;;  %v1880_v54 = vmul.f32 -1.442695, %v825_v51 }
 0x967   :  { %v2094_v52 = vpop.f32.mrf.mxu0 }
 0x968   :  { %2272 = vpow2.f32 %v1880_v54 }
 0x969   :  { %v828_v19 = vpop.f32.mrf.mxu0 }
 0x96b   :  { %v2095_v53 = vpop.f32.mrf.mxu0 }
 0x975   :  { %v2273_v55 = vpop.eup %2272 }
 0x976   :  { %v834_v56 = vadd.f32 1.0, %v2273_v55 }
 0x978   :  { %2274 = vrcp.f32 %v834_v56 }
 0x985   :  { %v2275_v57 = vpop.eup %2274 }
 0x986   :  { %v837_v58 = vmul.f32 %v2275_v57, %v825_v51 }
 0x9d8   :  { %v840_v59 = vpop.permute.xlu0 %839 }
 0x9d9   :  { %v842_v60 = vmul.f32 %v840_v59, %v837_v58 }
 0x9db   :  { %v843_v61 = vpack.c.bf16 %v842_v60, %v842_v60 }
 0x9dd   :  { %2105 = vmatmul.mubr.msk.bf16.vlgmr.msra.gmra.mxu1 %vm868_vm6, %v843_v61 }
 0x9de   :  { %2125 = vmatpush3.bf16.msra.mxu1 %v2420_v17  ;;  %2126 = vmatprep.mubr.msk.bf16.mxu1 %vm2325_vm1, %v2324_v4  ;;  %v2240_v17 = vld [vmem:[%s2733_s4 + $0x68] sm:$0xff]  }
 0x9df   :  { %2136 = vmatprep.subr.bf16.mxu1 %v2324_v4  ;;  %2109 = vmatpush3.bf16.msra.mxu0 %v2240_v17 }
 0x9e0   :  { %2110 = vmatprep.subr.bf16.mxu0 %v2324_v4 }
 0x9e3   :  { %2111 = vmatpush3.bf16.msra.mxu0 %v2241_v9 }
 0x9e4   :  { %2116 = vmatprep.subr.bf16.mxu0 %v2324_v4 }
 0xa9d   :  { %v906_v62 = vpop.f32.mrf.mxu1 }
 0xa9e   :  { %v2563_v63 = vadd.f32 %v906_v62, %v748_v32 }
 0xa9f   :  { %v2106_v1 = vpop.f32.mrf.mxu1 }
 0xaa0   :  { %v923_v2 = vmul.f32 %v2563_v63, %v2563_v63 }
 0xaa1   :  { %v909_v3 = vpop.f32.mrf.mxu1 }
 0xaa2   :  { %v924_v5 = vsel %vm41_vm0, %v923_v2, 0.0 }
 0xaa3   :  { %925 = vadd.xlane.f32.xlu0 %v924_v5  ;;  %v2107_v8 = vpop.f32.mrf.mxu1 }
 0xb2c   :  { %v926_v10 = vpop.xlane.xlu0 %925 }
 0xb2d   :  { %v927_v11 = vmul.f32 0.03125, %v926_v10 }
 0xb2f   :  { %v928_v12 = vadd.f32 1e-06, %v927_v11 }
 0xb31   :  { %2276 = vrsqrt.f32 %v928_v12 }
 0xb3e   :  { %v2277_v13 = vpop.eup %2276 }
 0xb3f   :  { %v930_v15 = vmul.f32 %v2277_v13, %v2563_v63 }
 0xb41   :  { %v935_v20 = vmul.f32 %v1894_v14, %v930_v15 }
 0xb43   :  { %v936_v21 = vpack.c.bf16 %v935_v20, %v935_v20 }
 0xb45   :  { %2113 = vmatmul.mubr.msk.bf16.vlgmr.msra.gmra.mxu0 %vm41_vm0, %v936_v21 }
 0xb46   :  { %2117 = vmatpush3.bf16.msra.mxu0 %v2397_v7  ;;  %2120 = vmatprep.mubr.msk.bf16.mxu0 %vm2325_vm1, %v2324_v4 }
 0xb47   :  { %2118 = vmatprep.subr.bf16.mxu0 %v2324_v4 }
 0xb4a   :  { %2119 = vmatpush3.bf16.msra.mxu0 %v2413_v16 }
 0xb4b   :  { %2130 = vmatprep.subr.bf16.mxu0 %v2324_v4 }
 0xc05   :  { %v2587_v22 = vpop.f32.mrf.mxu0 }
 0xc06   :  { %v2591_v23 = vpack.c.bf16 %v2587_v22, %v2587_v22  ;;  %v1036_v34 = vmul.f32 %v2587_v22, %v2392_v6  ;;  %v1085_v39 = vmul.f32 %v2587_v22, %v2450_v37 }
 0xc07   :  { %v2114_v25 = vpop.f32.mrf.mxu0 }
 0xc08   :  { %1040 = vrot.lane.b32.xlu1 %v2591_v23, %s2327_s9  ;;  %2121 = vmatmul.mubr.msk.bf16.vlgmr.msra.gmra.mxu0 %vm41_vm0, %v2591_v23 }
 0xc09   :  { %v989_v7 = vpop.f32.mrf.mxu0  ;;  %2132 = vmatprep.mubr.msk.bf16.mxu0 %vm2325_vm1, %v2324_v4 }
 0xc0b   :  { %v2115_v16 = vpop.f32.mrf.mxu0 }
 0xc7a   :  { %v1041_v26 = vpop.permute.xlu1 %1040 }
 0xc7b   :  { %2127 = vmatmul.mubr.msk.bf16.vlgmr.msra.gmra.mxu1 %vm179_vm2, %v1041_v26 }
 0xc7c   :  { %2138 = vmatprep.mubr.msk.bf16.mxu1 %vm2325_vm1, %v2324_v4 }
 0xcc8   :  { %v1030_v27 = vpop.f32.mrf.mxu0 }
 0xcc9   :  { %v1037_v32 = vmul.f32 %v1030_v27, %v2442_v24 }
 0xcca   :  { %v2122_v28 = vpop.f32.mrf.mxu0 }
 0xccb   :  { %v1038_v36 = vadd.f32 %v1037_v32, %v1036_v34 }
 0xccc   :  { %v1033_v29 = vpop.f32.mrf.mxu0 }
 0xccd   :  { %v1102_v44 = vpack.c.bf16 %v1038_v36, %v1038_v36 }
 0xcce   :  { %v2123_v30 = vpop.f32.mrf.mxu0 }
 0xd3b   :  { %v1079_v31 = vpop.f32.mrf.mxu1 }
 0xd3c   :  { %v1086_v18 = vmul.f32 %v1079_v31, %v2442_v24 }
 0xd3d   :  { %v2128_v33 = vpop.f32.mrf.mxu1 }
 0xd3e   :  { %1088 = vrot.lane.b32.xlu0 %v1086_v18, %s2326_s27 }
 0xd3f   :  { %v1082_v35 = vpop.f32.mrf.mxu1 }
 0xd41   :  { %v2129_v38 = vpop.f32.mrf.mxu1 }
 0xd42   :  { %1093 = vrot.lane.b32.xlu0 %v1038_v36, %s2329_s1 }
 0xd46   :  { %1096 = vrot.lane.b32.xlu0 %v1038_v36, %s2330_s13 }
 0xdb0   :  { %v1089_v0 = vpop.permute.xlu0 %1088 }
 0xdb1   :  { %v1091_v40 = vadd.f32 %v1089_v0, %v1085_v39 }
 0xdb3   :  { %1107 = vrot.lane.b32.xlu1 %v1091_v40, %s2329_s1  ;;  %v1110_v24 = vpack.c.bf16 %v1091_v40, %v1091_v40 }
 0xdb4   :  { %v1094_v37 = vpop.permute.xlu0 %1093 }
 0xdb5   :  { %v1103_v45 = vpack.c.bf16 %v1094_v37, %v1094_v37 }
 0xdb7   :  { %1118 = vrot.lane.b32.xlu1 %v1110_v24, %s2327_s9 }
 0xdb8   :  { %v1097_v48 = vpop.permute.xlu0 %1096 }
 0xdb9   :  { %v1104_v50 = vpack.c.bf16 %v1097_v48, %v1097_v48 }
 0xe25   :  { %v1108_v6 = vpop.permute.xlu1 %1107 }
 0xe26   :  { %v1111_v41 = vpack.c.bf16 %v1108_v6, %v1108_v6 }
 0xe28   :  { %1210 = vrot.lane.b32.xlu1 %v1111_v41, %s2327_s9 }
 0xe29   :  { %v1119_v42 = vpop.permute.xlu1 %1118 }
 0xe2a   :  { %v1124_v43 = vsel %vm262_vm3, %v1119_v42, 0 }
 0xe2b   :  { %2131 = vmatpush3.bf16.xpose.msra.mxu0 %v1124_v43  ;;  %2137 = vmatpush3.bf16.xpose.msra.mxu1 %v1124_v43 }
 0xe2c   :  { %1099 = vrot.lane.b32.xlu1 %v1038_v36, %s2328_s12  ;;  %2142 = vmatprep.subr.bf16.mxu0 %v2324_v4 }
 0xe2d   :  { %2148 = vmatprep.subr.bf16.mxu1 %v2324_v4 }
 0xe32   :  { %2133 = vmatmul.mubr.msk.bf16.vlgmr.msra.gmra.mxu0 %vm262_vm3, %v1102_v44  ;;  %2139 = vmatmul.mubr.msk.bf16.vlgmr.msra.gmra.mxu1 %vm262_vm3, %v1103_v45 }
 0xe33   :  { %2144 = vmatprep.mubr.msk.bf16.mxu0 %vm2325_vm1, %v2324_v4  ;;  %2150 = vmatprep.mubr.msk.bf16.mxu1 %vm2325_vm1, %v2324_v4 }
 0xe9a   :  { %v1211_v46 = vpop.permute.xlu1 %1210 }
 0xe9b   :  { %v1216_v47 = vsel %vm262_vm3, %v1211_v46, 0 }
 0xe9c   :  { %2143 = vmatpush3.bf16.xpose.msra.mxu0 %v1216_v47  ;;  %2149 = vmatpush3.bf16.xpose.msra.mxu1 %v1216_v47 }
 0xe9d   :  { %2154 = vmatprep.subr.bf16.mxu0 %v2324_v4  ;;  %2160 = vmatprep.subr.bf16.mxu1 %v2324_v4 }
 0xe9e   :  { %v1100_v49 = vpop.permute.xlu1 %1099 }
 0xe9f   :  { %v1105_v51 = vpack.c.bf16 %v1100_v49, %v1100_v49 }
 0xea3   :  { %2145 = vmatmul.mubr.msk.bf16.vlgmr.msra.gmra.mxu0 %vm262_vm3, %v1104_v50  ;;  %2151 = vmatmul.mubr.msk.bf16.vlgmr.msra.gmra.mxu1 %vm262_vm3, %v1105_v51 }
 0xea4   :  { %2156 = vmatprep.mubr.msk.bf16.mxu0 %vm2325_vm1, %v2324_v4  ;;  %2162 = vmatprep.mubr.msk.bf16.mxu1 %vm2325_vm1, %v2324_v4 }
 0xef2   :  { %v1160_v52 = vpop.f32.mrf.mxu0  ;;  %v1203_v19 = vpop.f32.mrf.mxu1 }
 0xef3   :  { %v1301_v53 = vsel %vm262_vm3, %v1160_v52, -inf  ;;  %v1304_v54 = vsel %vm262_vm3, %v1203_v19, -inf }
 0xef4   :  { %1302 = vmax.xlane.f32.xlu0 %v1301_v53  ;;  %v2134_v55 = vpop.f32.mrf.mxu0  ;;  %1305 = vmax.xlane.f32.xlu1 %v1304_v54  ;;  %v2140_v56 = vpop.f32.mrf.mxu1 }
 0xef6   :  { %v1163_v57 = vpop.f32.mrf.mxu0  ;;  %v1206_v58 = vpop.f32.mrf.mxu1 }
 0xef8   :  { %v2135_v59 = vpop.f32.mrf.mxu0  ;;  %v2141_v60 = vpop.f32.mrf.mxu1 }
 0xf05   :  { %1113 = vrot.lane.b32.xlu1 %v2587_v22, %s2329_s1 }
 0xf63   :  { %v1252_v61 = vpop.f32.mrf.mxu0  ;;  %v1295_v62 = vpop.f32.mrf.mxu1 }
 0xf64   :  { %v1307_v1 = vsel %vm262_vm3, %v1252_v61, -inf  ;;  %v1310_v17 = vsel %vm262_vm3, %v1295_v62, -inf }
 0xf65   :  { %1308 = vmax.xlane.f32.xlu0 %v1307_v1  ;;  %v2146_v2 = vpop.f32.mrf.mxu0  ;;  %v2152_v3 = vpop.f32.mrf.mxu1 }
 0xf67   :  { %v1255_v5 = vpop.f32.mrf.mxu0  ;;  %v1298_v8 = vpop.f32.mrf.mxu1 }
 0xf69   :  { %v2147_v9 = vpop.f32.mrf.mxu0  ;;  %1311 = vmax.xlane.f32.xlu0 %v1310_v17  ;;  %v2153_v10 = vpop.f32.mrf.mxu1 }
 0xf7d   :  { %v1303_v11 = vpop.xlane.xlu0 %1302  ;;  %v1306_v12 = vpop.xlane.xlu1 %1305 }
 0xf7e   :  { %v1313_v13 = vsub.f32 %v1160_v52, %v1303_v11  ;;  %v1314_v14 = vsub.f32 %v1203_v19, %v1306_v12  ;;  %v2242_v52 = vld [vmem:[%s2733_s4 + $0x78] sm:$0xff]   ;;  %v2243_v19 = vld [vmem:[%s2733_s4 + $0x70] sm:$0xff]  }
 0xf80   :  { %v1317_v15 = vmul.f32 1.442695, %v1313_v13  ;;  %v1319_v20 = vmul.f32 1.442695, %v1314_v14 }
 0xf81   :  { %v1114_v21 = vpop.permute.xlu1 %1113 }
 0xf82   :  { %2278 = vpow2.f32 %v1317_v15  ;;  %v1116_v22 = vpack.c.bf16 %v1114_v21, %v1114_v21 }
 0xf83   :  { %2280 = vpow2.f32 %v1319_v20 }
 0xf84   :  { %1441 = vrot.lane.b32.xlu1 %v1116_v22, %s2331_s14 }
 0xf8f   :  { %v2279_v25 = vpop.eup %2278 }
 0xf90   :  { %v1325_v7 = vsel %vm262_vm3, %v2279_v25, 0.0  ;;  %v2281_v16 = vpop.eup %2280 }
 0xf91   :  { %1326 = vadd.xlane.f32.xlu0 %v1325_v7  ;;  %v1328_v26 = vsel %vm262_vm3, %v2281_v16, 0.0 }
 0xf95   :  { %1329 = vadd.xlane.f32.xlu0 %v1328_v26 }
 0xfee   :  { %v1309_v27 = vpop.xlane.xlu0 %1308 }
 0xfef   :  { %v1315_v28 = vsub.f32 %v1252_v61, %v1309_v27  ;;  %v2244_v27 = vld [vmem:[%s2733_s4 + $0x58] sm:$0xff]  }
 0xff1   :  { %v1321_v29 = vmul.f32 1.442695, %v1315_v28  ;;  %v2245_v28 = vld [vmem:[%s2733_s4 + $0x50] sm:$0xff]  }
 0xff2   :  { %v1312_v30 = vpop.xlane.xlu0 %1311 }
 0xff3   :  { %2282 = vpow2.f32 %v1321_v29  ;;  %v1316_v31 = vsub.f32 %v1295_v62, %v1312_v30 }
 0xff5   :  { %v1323_v32 = vmul.f32 1.442695, %v1316_v31 }
 0xff6   :  { %v1442_v37 = vpop.permute.xlu1 %1441 }
 0xff7   :  { %2284 = vpow2.f32 %v1323_v32  ;;  %v1447_v45 = vsel %vm497_vm4, %v1442_v37, 0  ;;  %v1923_v32 = vld [vmem:[%s2731_s2 + $0x3] ss:$0 sm:$0xff] }
0x1000   :  { %v2283_v18 = vpop.eup %2282 }
0x1001   :  { %v1331_v33 = vsel %vm262_vm3, %v2283_v18, 0.0 }
0x1002   :  { %1332 = vadd.xlane.f32.xlu0 %v1331_v33 }
0x1004   :  { %v2285_v34 = vpop.eup %2284 }
0x1005   :  { %v1334_v35 = vsel %vm262_vm3, %v2285_v34, 0.0 }
0x1006   :  { %1335 = vadd.xlane.f32.xlu0 %v1334_v35  ;;  %v2246_v35 = vld [vmem:[%s2733_s4 + $0x98] sm:$0xff]  }
0x101a   :  { %v1327_v36 = vpop.xlane.xlu0 %1326 }
0x101b   :  { %2286 = vrcp.f32 %v1327_v36  ;;  %v2247_v36 = vld [vmem:[%s2733_s4 + $0x90] sm:$0xff]  }
0x101c   :  { %1349 = vrot.lane.b32.xlu0 %v2591_v23, %s2331_s14 }
0x101e   :  { %v1330_v38 = vpop.xlane.xlu0 %1329 }
0x101f   :  { %2288 = vrcp.f32 %v1330_v38  ;;  %v2248_v38 = vld [vmem:[%s2733_s4 + $0x88] sm:$0xff]  }
0x1028   :  { %v2287_v0 = vpop.eup %2286 }
0x1029   :  { %v1341_v6 = vmul.f32 %v2287_v0, %v2279_v25 }
0x102b   :  { %v1345_v44 = vpack.c.bf16 %v1341_v6, %v1341_v6 }
0x102c   :  { %v2289_v40 = vpop.eup %2288 }
0x102d   :  { %v1342_v41 = vmul.f32 %v2289_v40, %v2281_v16 }
0x102f   :  { %v1346_v23 = vpack.c.bf16 %v1342_v41, %v1342_v41 }
0x108b   :  { %v1333_v39 = vpop.xlane.xlu0 %1332 }
0x108c   :  { %2290 = vrcp.f32 %v1333_v39  ;;  %v2249_v39 = vld [vmem:[%s2733_s4 + $0x80] sm:$0xff]  }
0x108f   :  { %v1336_v24 = vpop.xlane.xlu0 %1335 }
0x1090   :  { %2292 = vrcp.f32 %v1336_v24 }
0x1093   :  { %v1350_v42 = vpop.permute.xlu0 %1349 }
0x1094   :  { %v1355_v43 = vsel %vm497_vm4, %v1350_v42, 0 }
0x1095   :  { %2155 = vmatpush3.bf16.msra.mxu0 %v1355_v43  ;;  %2161 = vmatpush3.bf16.msra.mxu1 %v1355_v43 }
0x1096   :  { %2166 = vmatprep.subr.bf16.mxu0 %v2324_v4  ;;  %2172 = vmatprep.subr.bf16.mxu1 %v2324_v4 }
0x1098   :  { %2157 = vmatmul.mubr.msk.bf16.vlgmr.msra.gmra.mxu0 %vm262_vm3, %v1345_v44  ;;  %2163 = vmatmul.mubr.msk.bf16.vlgmr.msra.gmra.mxu1 %vm262_vm3, %v1346_v23 }
0x1099   :  { %v2291_v46 = vpop.eup %2290  ;;  %2167 = vmatpush3.bf16.msra.mxu0 %v1447_v45  ;;  %2173 = vmatpush3.bf16.msra.mxu1 %v1447_v45 }
0x109a   :  { %2168 = vmatprep.mubr.msk.bf16.mxu0 %vm2325_vm1, %v2324_v4  ;;  %v1343_v47 = vmul.f32 %v2291_v46, %v2283_v18  ;;  %2174 = vmatprep.mubr.msk.bf16.mxu1 %vm2325_vm1, %v2324_v4 }
0x109b   :  { %2178 = vmatprep.subr.bf16.mxu0 %v2324_v4  ;;  %2186 = vmatprep.subr.bf16.mxu1 %v2324_v4 }
0x109c   :  { %v1347_v49 = vpack.c.bf16 %v1343_v47, %v1343_v47 }
0x109d   :  { %v2293_v48 = vpop.eup %2292 }
0x109e   :  { %v1344_v50 = vmul.f32 %v2293_v48, %v2285_v34 }
0x10a0   :  { %2169 = vmatmul.mubr.msk.bf16.vlgmr.msra.gmra.mxu0 %vm262_vm3, %v1347_v49  ;;  %v1348_v51 = vpack.c.bf16 %v1344_v50, %v1344_v50 }
0x10a1   :  { %2182 = vmatprep.mubr.msk.bf16.mxu0 %vm2325_vm1, %v2324_v4  ;;  %2179 = vmatpush3.bf16.msra.mxu0 %v2242_v52 }
0x10a2   :  { %2175 = vmatmul.mubr.msk.bf16.vlgmr.msra.gmra.mxu1 %vm262_vm3, %v1348_v51  ;;  %2180 = vmatprep.subr.bf16.mxu0 %v2324_v4 }
0x10a3   :  { %2190 = vmatprep.mubr.msk.bf16.mxu1 %vm2325_vm1, %v2324_v4  ;;  %2187 = vmatpush3.bf16.msra.mxu1 %v2244_v27 }
0x10a4   :  { %2188 = vmatprep.subr.bf16.mxu1 %v2324_v4 }
0x10a5   :  { %2181 = vmatpush3.bf16.msra.mxu0 %v2243_v19 }
0x10a6   :  { %2194 = vmatprep.subr.bf16.mxu0 %v2324_v4 }
0x10a7   :  { %2189 = vmatpush3.bf16.msra.mxu1 %v2245_v28 }
0x10a8   :  { %2206 = vmatprep.subr.bf16.mxu1 %v2324_v4 }
0x1158   :  { %v1391_v53 = vpop.f32.mrf.mxu0  ;;  %v1434_v54 = vpop.f32.mrf.mxu1 }
0x1159   :  { %1533 = vrot.lane.b32.xlu1 %v1434_v54, %s2332_s19  ;;  %v2251_v54 = vld [vmem:[%s2732_s3] sm:$0xff]  }
0x115a   :  { %v2158_v55 = vpop.f32.mrf.mxu0  ;;  %v2164_v56 = vpop.f32.mrf.mxu1 }
0x115c   :  { %v1394_v57 = vpop.f32.mrf.mxu0  ;;  %v1437_v58 = vpop.f32.mrf.mxu1 }
0x115e   :  { %v2159_v59 = vpop.f32.mrf.mxu0  ;;  %v2165_v60 = vpop.f32.mrf.mxu1 }
0x115f   :  { %v1933_v59 = vld [vmem:[%s2731_s2 + $0x4] ss:$0 sm:$0xff] }
0x1160   :  { %v1483_v61 = vpop.f32.mrf.mxu0 }
0x1161   :  { %1537 = vrot.lane.b32.xlu1 %v1483_v61, %s2333_s20 }
0x1162   :  { %v2170_v62 = vpop.f32.mrf.mxu0  ;;  %v1526_v1 = vpop.f32.mrf.mxu1 }
0x1164   :  { %v1486_v2 = vpop.f32.mrf.mxu0  ;;  %v2176_v3 = vpop.f32.mrf.mxu1 }
0x1165   :  { %1541 = vrot.lane.b32.xlu1 %v1526_v1, %s2334_s21 }
0x1166   :  { %v2171_v5 = vpop.f32.mrf.mxu0  ;;  %v1529_v8 = vpop.f32.mrf.mxu1 }
0x1168   :  { %v2177_v17 = vpop.f32.mrf.mxu1 }
0x11cb   :  { %v1534_v9 = vpop.permute.xlu1 %1533 }
0x11cc   :  { %v1544_v11 = vsel %vm262_vm3, %v1391_v53, %v1534_v9  ;;  %v2250_v53 = vld [vmem:[%s2732_s3 + $0x8] sm:$0xff]   ;;  %s2302_s3 = scalar_lea.vmem %s1849_s0, 128 }
0x11cd   :  { %p2303_p0 = scmp.ne.s32.totalorder %s1849_s0, %s2302_s3  ;;  %p2308_p2 = scmp.lt.s32.totalorder %s2302_s3, %s2302_s3 }
0x11cf   :  { %p2309_p3 = por %p2308_p2, %p2307_p1 }
0x11d1   :  { %p2310_p4 = pnand %p2309_p3, %p2303_p0 }
0x11d3   :  { %v1538_v10 = vpop.permute.xlu1 %1537 }
0x11d4   :  { %v1545_v12 = vsel %vm179_vm2, %v1544_v11, %v1538_v10 }
0x11d7   :  { %v1542_v13 = vpop.permute.xlu1 %1541 }
0x11d8   :  { %v1546_v14 = vsel %vm690_vm5, %v1545_v12, %v1542_v13 }
0x11d9   :  { %v1547_v15 = vpack.c.bf16 %v1546_v14, %v1546_v14 }
0x11db   :  { %2183 = vmatmul.mubr.msk.bf16.vlgmr.msra.gmra.mxu0 %vm41_vm0, %v1547_v15 }
0x11dc   :  { %2202 = vmatprep.mubr.msk.bf16.mxu0 %vm2325_vm1, %v2324_v4  ;;  %2195 = vmatpush3.bf16.msra.mxu0 %v2246_v35 }
0x11dd   :  { %2196 = vmatprep.subr.bf16.mxu0 %v2324_v4 }
0x11e0   :  { %2197 = vmatpush3.bf16.msra.mxu0 %v2247_v36 }
0x11e1   :  { %2198 = vmatprep.subr.bf16.mxu0 %v2324_v4 }
0x11e4   :  { %2199 = vmatpush3.bf16.msra.mxu0 %v2248_v38 }
0x11e5   :  { %2200 = vmatprep.subr.bf16.mxu0 %v2324_v4 }
0x11e8   :  { %2201 = vmatpush3.bf16.msra.mxu0 %v2249_v39 }
0x129b   :  { %v1597_v20 = vpop.f32.mrf.mxu0 }
0x129c   :  { %v1603_v21 = vadd.f32 %v1597_v20, %v2563_v63 }
0x129d   :  { %v2184_v22 = vpop.f32.mrf.mxu0 }
0x129e   :  { %v1617_v25 = vmul.f32 %v1603_v21, %v1603_v21 }
0x129f   :  { %v1600_v7 = vpop.f32.mrf.mxu0 }
0x12a0   :  { %v1618_v16 = vsel %vm41_vm0, %v1617_v25, 0.0 }
0x12a1   :  { %1619 = vadd.xlane.f32.xlu1 %v1618_v16  ;;  %v2185_v26 = vpop.f32.mrf.mxu0 }
0x132a   :  { %v1620_v63 = vpop.xlane.xlu1 %1619 }
0x132b   :  { %v1621_v29 = vmul.f32 0.03125, %v1620_v63 }
0x132d   :  { %v1622_v30 = vadd.f32 1e-06, %v1621_v29 }
0x132f   :  { %2294 = vrsqrt.f32 %v1622_v30 }
0x133c   :  { %v2295_v31 = vpop.eup %2294 }
0x133d   :  { %v1624_v18 = vmul.f32 %v2295_v31, %v1603_v21 }
0x133f   :  { %v1629_v33 = vmul.f32 %v1923_v32, %v1624_v18 }
0x1341   :  { %v1630_v34 = vpack.c.bf16 %v1629_v33, %v1629_v33 }
0x1343   :  { %2191 = vmatmul.mubr.msk.bf16.vlgmr.msra.gmra.mxu1 %vm41_vm0, %v1630_v34 }
0x1344   :  { %2210 = vmatprep.mubr.msk.bf16.mxu1 %vm2325_vm1, %v2324_v4  ;;  %2207 = vmatpush3.bf16.msra.mxu1 %v2250_v53 }
0x1345   :  { %2208 = vmatprep.subr.bf16.mxu1 %v2324_v4 }
0x1348   :  { %2209 = vmatpush3.bf16.msra.mxu1 %v2251_v54 }
0x1403   :  { %v1680_v0 = vpop.f32.mrf.mxu1 }
0x1404   :  { %1694 = vrot.lane.b32.xlu0 %v1680_v0, %s2335_s15  ;;  %v1927_v41 = vmul.f32 -1.442695, %v1680_v0 }
0x1405   :  { %v2192_v40 = vpop.f32.mrf.mxu1 }
0x1406   :  { %2296 = vpow2.f32 %v1927_v41 }
0x1407   :  { %v1683_v24 = vpop.f32.mrf.mxu1 }
0x1409   :  { %v2193_v6 = vpop.f32.mrf.mxu1 }
0x1413   :  { %v2297_v42 = vpop.eup %2296 }
0x1414   :  { %v1689_v43 = vadd.f32 1.0, %v2297_v42 }
0x1416   :  { %2298 = vrcp.f32 %v1689_v43 }
0x1423   :  { %v2299_v37 = vpop.eup %2298 }
0x1424   :  { %v1692_v44 = vmul.f32 %v2299_v37, %v1680_v0 }
0x1476   :  { %v1695_v23 = vpop.permute.xlu0 %1694 }
0x1477   :  { %v1697_v45 = vmul.f32 %v1695_v23, %v1692_v44 }
0x1479   :  { %v1698_v46 = vpack.c.bf16 %v1697_v45, %v1697_v45 }
0x147b   :  { %2203 = vmatmul.mubr.msk.bf16.vlgmr.msra.gmra.mxu0 %vm868_vm6, %v1698_v46 }
0x153b   :  { %v1760_v47 = vpop.f32.mrf.mxu0 }
0x153c   :  { %v1766_v48 = vadd.f32 %v1760_v47, %v1603_v21 }
0x153d   :  { %v2204_v49 = vpop.f32.mrf.mxu0 }
0x153e   :  { %v1768_v50 = vmul.f32 %v1766_v48, %v1766_v48 }
0x153f   :  { %v1763_v51 = vpop.f32.mrf.mxu0 }
0x1540   :  { %v1769_v52 = vsel %vm41_vm0, %v1768_v50, 0.0 }
0x1541   :  { %1770 = vadd.xlane.f32.xlu0 %v1769_v52  ;;  %v2205_v19 = vpop.f32.mrf.mxu0 }
0x15ca   :  { %v1771_v55 = vpop.xlane.xlu0 %1770 }
0x15cb   :  { %v1772_v56 = vmul.f32 0.03125, %v1771_v55 }
0x15cd   :  { %v1773_v57 = vadd.f32 1e-06, %v1772_v56 }
0x15cf   :  { %2300 = vrsqrt.f32 %v1773_v57 }
0x15dc   :  { %v2301_v58 = vpop.eup %2300 }
0x15dd   :  { %v1775_v60 = vmul.f32 %v2301_v58, %v1766_v48 }
0x15df   :  { %v1780_v61 = vmul.f32 %v1933_v59, %v1775_v60 }
0x15e1   :  { %v1785_v62 = vpack.c.bf16 %v1780_v61, %v1780_v61 }
0x15e3   :  { %2211 = vmatmul.mubr.msk.bf16.vlgmr.msra.gmra.mxu1 %vm41_vm0, %v1785_v62 }
0x16a3   :  { %v1835_v1 = vpop.f32.mrf.mxu1 }
0x16a4   :  { %1841 = vst [vmem:[#allocation2] sm:$0xff] %v1835_v1 }
0x16a5   :  { %v2212_v4 = vpop.f32.mrf.mxu1 }
0x16a6   :  { %2313 = shalt.err (!%p2310_p4)
}
0x16a7   :  { %1851 = dma.vmem_to_hbm [thread:$0]  %s1849_s0, 128, %s2734_s5, [#allocation3]   ;;  %v1838_v2 = vpop.f32.mrf.mxu1 }
0x16a9   :  { %v2213_v3 = vpop.f32.mrf.mxu1 }
0x16aa   :  { %2322 = dma.done.wait [#allocation3], 128  }
0x16ab   :  { %2323 = vsyncadd [#allocation3], 4294967168 }
0x16ac   :  { %1855 = vsyncpa [#allocation3], 1 }

</bundles_post_ra>
